<compile_context>
chip_gen: v7x
topology: tpu7x:2x2x1
jax: 0.10.0
libtpu: 0.0.40
codegen_flags: <defaults>
</compile_context>

<pallas_src>
import functools

import jax
import jax.numpy as jnp
from jax.experimental import pallas as pl
from jax.experimental.pallas import tpu as pltpu

_SQRT2_INV = 0.7071067811865476  # 1/sqrt(2) for exact (erf-based) GELU


def _residual_dwconv_gelu_bn_kernel(x_ref, w_ref, bias_ref, scale_ref, shift_ref,
                                    o_ref, xpad_ref, *, K, p, wl, approx_gelu):
    """One (channel-group, image) tile per grid step.

    x_ref     : (1, H, W, TC)        input tile (NHWC: channels on lanes)
    w_ref     : (K*K, TC)            depthwise conv taps (lane vectors)
    bias_ref  : (1, TC)              conv bias
    scale_ref : (1, TC)              folded BN scale = gamma / sqrt(var + eps)
    shift_ref : (1, TC)              folded BN shift = beta - mean * scale
    o_ref     : (1, H, W, TC)        output tile
    xpad_ref  : (H+2p, wl+W+p, TC)   f32 VMEM scratch: zero-halo conv operand
    """
    H, W, TC = x_ref.shape[1], x_ref.shape[2], x_ref.shape[3]

    # Single HBM read of x: cast straight into the scratch interior.  The interior
    # store lands at sublane (column) offset `wl`, a multiple of 8 -> aligned vst.
    xpad_ref[p:p + H, wl:wl + W, :] = x_ref[0].astype(jnp.float32)

    # Zero only the halo strips the K*K taps actually read:
    #   rows [0,p) and [p+H, p+H+p) over columns [wl-p, wl+W+p),
    #   columns [wl-p, wl) and [wl+W, wl+W+p) over the interior rows.
    if p > 0:
        zrow = jnp.zeros((p, W + 2 * p, TC), jnp.float32)
        xpad_ref[0:p, wl - p:wl + W + p, :] = zrow                      # top halo
        xpad_ref[p + H:p + H + p, wl - p:wl + W + p, :] = zrow          # bottom halo
        zcol = jnp.zeros((H, p, TC), jnp.float32)
        xpad_ref[p:p + H, wl - p:wl, :] = zcol                          # left cols
        xpad_ref[p:p + H, wl + W:wl + W + p, :] = zcol                  # right cols

    # Depthwise "same" conv: K*K shifted MACs, f32 accumulation.  The conv bias is
    # folded into the first tap's add (saves one VALU add/elem and a zeros init).
    # TODO(synk): inspect the Mosaic lowering of the dj-shifted patch loads; if they
    # emit sublane rotates/selects per tap, switch to one aligned load per di row plus
    # pltpu.roll with an edge mask.
    wt = w_ref[...].astype(jnp.float32)                                  # (K*K, TC)
    bias_row = bias_ref[...].astype(jnp.float32).reshape(1, 1, TC)
    acc = None
    for di in range(K):
        for dj in range(K):
            patch = xpad_ref[di:di + H, wl - p + dj:wl - p + dj + W, :]  # (H, W, TC)
            wk = wt[di * K + dj:di * K + dj + 1, :].reshape(1, 1, TC)    # lane vector
            if acc is None:
                acc = patch * wk + bias_row
            else:
                acc = acc + patch * wk

    # GELU: tanh approximation by default (tanh runs on the EUP slot, fully hidden
    # under the conv's VALU work); exact erf path kept for torch.nn.GELU() parity.
    if approx_gelu:
        g = jax.nn.gelu(acc, approximate=True)
    else:
        g = 0.5 * acc * (1.0 + jax.lax.erf(acc * _SQRT2_INV))

    # Inference BatchNorm folded to a per-channel affine, then the residual add
    # (residual re-read from the scratch interior: x came from HBM exactly once).
    y = (g * scale_ref[...].astype(jnp.float32).reshape(1, 1, TC)
         + shift_ref[...].astype(jnp.float32).reshape(1, 1, TC))
    o_ref[0] = (y + xpad_ref[p:p + H, wl:wl + W, :]).astype(o_ref.dtype)


@functools.lru_cache(maxsize=None)
def _vmem_capacity_bytes():
    try:
        return int(pltpu.get_tpu_info().vmem_capacity_bytes)
    except Exception:
        return 64 * 1024 * 1024        # conservative (v7x-sized) fallback


def _pick_channel_tile(C, N, H, W, itemsize, budget, min_grid_steps):
    """Largest multiple-of-128 divisor of C whose (H, W, tc) activation block fits
    `budget` bytes while keeping at least `min_grid_steps` grid steps (so both v7x
    TensorCores get work).  Non-128-aligned channel counts are taken whole."""
    if C % 128 != 0:
        return C
    divisors = [c for c in range(128, C + 1, 128) if C % c == 0]
    fitting = [c for c in divisors if H * W * c * itemsize <= budget] or [128]
    parallel_ok = [c for c in fitting if N * (C // c) >= min_grid_steps]
    return max(parallel_ok) if parallel_ok else max(fitting)


@functools.partial(jax.jit, static_argnames=("eps", "approximate_gelu"))
def residual_convmixer_block(x, w, bias, gamma, beta, run_mean, run_var,
                             eps=1e-5, approximate_gelu=True):
    """Residual(fn)(x) = fn(x) + x with fn = DWConv("same") -> GELU -> BatchNorm2d.

    x is NHWC (N, H, W, C) — TPU-native layout; mathematically identical to the
    PyTorch NCHW module up to a transpose of inputs/outputs.  w is the depthwise
    Conv2d weight (C, K, K) (PyTorch's (C, 1, K, K) squeezed); the rest are (C,).
    """
    N, H, W, C = x.shape
    K = w.shape[-1]
    assert K % 2 == 1, "padding='same' symmetric halo only matches PyTorch for odd K"
    p = K // 2
    wl = ((p + 7) // 8) * 8           # sublane-aligned left halo width in the scratch

    # Glue (tiny): BN fold + lane-aligned parameter layouts.
    scale = (gamma / jnp.sqrt(run_var + eps)).astype(jnp.float32)
    shift = (beta - run_mean * scale).astype(jnp.float32)
    w_t = jnp.transpose(w.reshape(C, K * K), (1, 0)).astype(jnp.float32)   # (K*K, C)
    bias2 = bias.reshape(1, C).astype(jnp.float32)
    scale2 = scale.reshape(1, C)
    shift2 = shift.reshape(1, C)

    # Generation-aware tiling / VMEM budget (v7x has 64 MiB per TC and 2 TCs/chip).
    vmem_cap = _vmem_capacity_bytes()
    small_vmem = vmem_cap <= 64 * 1024 * 1024
    budget = (1 if small_vmem else 2) * 1024 * 1024
    min_grid_steps = 4 if small_vmem else 2
    tc = _pick_channel_tile(C, N, H, W, x.dtype.itemsize, budget, min_grid_steps)
    grid = (C // tc, N)   # channel-major: param blocks stay resident across the N loop

    # VMEM accounting: double-buffered in/out activation blocks, the halo scratch
    # (single-buffered), f32 in-kernel temporaries (acc + GELU intermediates),
    # parameter blocks, plus ~2 MiB margin; generation-aware ceiling.
    blk = H * W * tc * x.dtype.itemsize
    scratch_bytes = (H + 2 * p) * (wl + W + p) * tc * 4
    temp_bytes = 3 * H * W * tc * 4
    param_bytes = 2 * (K * K + 3) * tc * 4
    cap = (48 if small_vmem else 100) * 1024 * 1024
    vmem_limit = 4 * blk + scratch_bytes + temp_bytes + param_bytes + 2 * 1024 * 1024
    vmem_limit = int(max(8 * 1024 * 1024, min(vmem_limit, cap)))

    kernel = functools.partial(_residual_dwconv_gelu_bn_kernel, K=K, p=p, wl=wl,
                               approx_gelu=approximate_gelu)
    return pl.pallas_call(
        kernel,
        out_shape=jax.ShapeDtypeStruct((N, H, W, C), x.dtype),
        grid_spec=pltpu.PrefetchScalarGridSpec(
            num_scalar_prefetch=0,
            grid=grid,
            in_specs=[
                pl.BlockSpec((1, H, W, tc), lambda c, n: (n, 0, 0, c)),   # x tile
                pl.BlockSpec((K * K, tc), lambda c, n: (0, c)),           # dw conv taps
                pl.BlockSpec((1, tc), lambda c, n: (0, c)),               # conv bias
                pl.BlockSpec((1, tc), lambda c, n: (0, c)),               # bn scale
                pl.BlockSpec((1, tc), lambda c, n: (0, c)),               # bn shift
            ],
            out_specs=pl.BlockSpec((1, H, W, tc), lambda c, n: (n, 0, 0, c)),
            scratch_shapes=[pltpu.VMEM((H + 2 * p, wl + W + p, tc), jnp.float32)],
        ),
        compiler_params=pltpu.CompilerParams(
            dimension_semantics=("parallel", "parallel"),
            vmem_limit_bytes=vmem_limit,
        ),
    )(x, w_t, bias2, scale2, shift2)


def _reference(x, w, bias, gamma, beta, run_mean, run_var, eps=1e-5,
               approximate_gelu=True):
    """Pure-JAX NHWC reference of fn(x) + x for verification."""
    N, H, W, C = x.shape
    K = w.shape[-1]
    rhs = jnp.transpose(w, (1, 2, 0)).reshape(K, K, 1, C)      # HWIO depthwise filter
    conv = jax.lax.conv_general_dilated(
        x, rhs, window_strides=(1, 1), padding="SAME",
        dimension_numbers=("NHWC", "HWIO", "NHWC"),
        feature_group_count=C,
        precision=jax.lax.Precision.HIGHEST,
    ) + bias.reshape(1, 1, 1, C)
    if approximate_gelu:
        g = jax.nn.gelu(conv, approximate=True)
    else:
        g = 0.5 * conv * (1.0 + jax.lax.erf(conv * _SQRT2_INV))
    scale = gamma / jnp.sqrt(run_var + eps)
    shift = beta - run_mean * scale
    return g * scale.reshape(1, 1, 1, C) + shift.reshape(1, 1, 1, C) + x


if __name__ == "__main__":
    cases = [
        # (N, H, W, C, K)
        (2, 16, 16, 256, 3),    # lane-dense ConvMixer-like width
        (2, 16, 16, 1024, 5),   # channel-group tiling path, K=5
        (2, 16, 16, 4, 3),      # tiny / non-128-aligned fallback (tc = C)
    ]
    key = jax.random.PRNGKey(0)
    for (N, H, W, C, K) in cases:
        key, kx, kw, kb, kg, kbt, km, kv = jax.random.split(key, 8)
        x = jax.random.normal(kx, (N, H, W, C), dtype=jnp.float32)
        # Depthwise conv params: Conv2d(C, C, K, groups=C) -> weight (C, K, K), bias (C,)
        w = jax.random.normal(kw, (C, K, K), dtype=jnp.float32) * 0.2
        bias = jax.random.normal(kb, (C,), dtype=jnp.float32) * 0.1
        # BatchNorm2d(C) inference-mode parameters.
        gamma = 1.0 + 0.1 * jax.random.normal(kg, (C,), dtype=jnp.float32)
        beta = 0.1 * jax.random.normal(kbt, (C,), dtype=jnp.float32)
        run_mean = 0.1 * jax.random.normal(km, (C,), dtype=jnp.float32)
        run_var = 1.0 + 0.1 * jax.nn.softplus(
            jax.random.normal(kv, (C,), dtype=jnp.float32))

        for approx in (True, False):
            out = jax.block_until_ready(
                residual_convmixer_block(x, w, bias, gamma, beta, run_mean, run_var,
                                         approximate_gelu=approx))
            ref = _reference(x, w, bias, gamma, beta, run_mean, run_var,
                             approximate_gelu=approx)
            assert out.shape == x.shape and out.dtype == x.dtype
            assert jnp.allclose(out, ref, atol=5e-5, rtol=5e-5), \
                f"mismatch vs reference for case {(N, H, W, C, K)}, approx={approx}"

    print("KERNEL_OK")
</pallas_src>

<mosaic_0001>
module attributes {stable_mosaic.version = 11 : i64} {
  func.func @_residual_dwconv_gelu_bn_kernel(%arg0: i32, %arg1: i32, %arg2: memref<1x16x16x128xf32, #tpu.memory_space<vmem>>, %arg3: memref<9x128xf32, #tpu.memory_space<vmem>>, %arg4: memref<1x128xf32, #tpu.memory_space<vmem>>, %arg5: memref<1x128xf32, #tpu.memory_space<vmem>>, %arg6: memref<1x128xf32, #tpu.memory_space<vmem>>, %arg7: memref<1x16x16x128xf32, #tpu.memory_space<vmem>>, %arg8: memref<18x25x128xf32, #tpu.memory_space<vmem>>) attributes {dimension_semantics = [#tpu.dimension_semantics<parallel>, #tpu.dimension_semantics<parallel>], iteration_bounds = array<i64: 2, 2>, scalar_prefetch = 0 : i64, scratch_operands = 1 : i64, tpu.core_type = #tpu.core_type<tc>, window_params = [{transform_indices = @transform_0, window_bounds = array<i64: 1, 16, 16, 128>}, {transform_indices = @transform_1, window_bounds = array<i64: 9, 128>}, {transform_indices = @transform_2, window_bounds = array<i64: 1, 128>}, {transform_indices = @transform_3, window_bounds = array<i64: 1, 128>}, {transform_indices = @transform_4, window_bounds = array<i64: 1, 128>}, {transform_indices = @transform_5, window_bounds = array<i64: 1, 16, 16, 128>}]} {
    %c0 = arith.constant 0 : index
    %c0_0 = arith.constant 0 : index
    %c0_1 = arith.constant 0 : index
    %c0_2 = arith.constant 0 : index
    %0 = vector.load %arg2[%c0, %c0_0, %c0_1, %c0_2] : memref<1x16x16x128xf32, #tpu.memory_space<vmem>>, vector<1x16x16x128xf32>
    %1 = vector.shape_cast %0 : vector<1x16x16x128xf32> to vector<16x16x128xf32>
    %c1 = arith.constant 1 : index
    %c8 = arith.constant 8 : index
    %c0_3 = arith.constant 0 : index
    %2 = vector.load %arg8[%c1, %c8, %c0_3] : memref<18x25x128xf32, #tpu.memory_space<vmem>>, vector<16x16x128xf32>
    tpu.vector_store %arg8[%c1, %c8, %c0_3], %1 {strides = array<i32>} : memref<18x25x128xf32, #tpu.memory_space<vmem>>, vector<16x16x128xf32>,
    %cst = arith.constant 0.000000e+00 : f32
    %3 = vector.broadcast %cst : f32 to vector<1x18x128xf32>
    %c0_4 = arith.constant 0 : index
    %c7 = arith.constant 7 : index
    %c0_5 = arith.constant 0 : index
    %4 = vector.load %arg8[%c0_4, %c7, %c0_5] : memref<18x25x128xf32, #tpu.memory_space<vmem>>, vector<1x18x128xf32>
    tpu.vector_store %arg8[%c0_4, %c7, %c0_5], %3 {strides = array<i32>} : memref<18x25x128xf32, #tpu.memory_space<vmem>>, vector<1x18x128xf32>,
    %c17 = arith.constant 17 : index
    %c7_6 = arith.constant 7 : index
    %c0_7 = arith.constant 0 : index
    %5 = vector.load %arg8[%c17, %c7_6, %c0_7] : memref<18x25x128xf32, #tpu.memory_space<vmem>>, vector<1x18x128xf32>
    tpu.vector_store %arg8[%c17, %c7_6, %c0_7], %3 {strides = array<i32>} : memref<18x25x128xf32, #tpu.memory_space<vmem>>, vector<1x18x128xf32>,
    %cst_8 = arith.constant 0.000000e+00 : f32
    %6 = vector.broadcast %cst_8 : f32 to vector<16x1x128xf32>
    %c1_9 = arith.constant 1 : index
    %c7_10 = arith.constant 7 : index
    %c0_11 = arith.constant 0 : index
    %7 = vector.load %arg8[%c1_9, %c7_10, %c0_11] : memref<18x25x128xf32, #tpu.memory_space<vmem>>, vector<16x1x128xf32>
    tpu.vector_store %arg8[%c1_9, %c7_10, %c0_11], %6 {strides = array<i32>} : memref<18x25x128xf32, #tpu.memory_space<vmem>>, vector<16x1x128xf32>,
    %c1_12 = arith.constant 1 : index
    %c24 = arith.constant 24 : index
    %c0_13 = arith.constant 0 : index
    %8 = vector.load %arg8[%c1_12, %c24, %c0_13] : memref<18x25x128xf32, #tpu.memory_space<vmem>>, vector<16x1x128xf32>
    tpu.vector_store %arg8[%c1_12, %c24, %c0_13], %6 {strides = array<i32>} : memref<18x25x128xf32, #tpu.memory_space<vmem>>, vector<16x1x128xf32>,
    %c0_14 = arith.constant 0 : index
    %c0_15 = arith.constant 0 : index
    %9 = vector.load %arg3[%c0_14, %c0_15] : memref<9x128xf32, #tpu.memory_space<vmem>>, vector<9x128xf32>
    %c0_16 = arith.constant 0 : index
    %c0_17 = arith.constant 0 : index
    %10 = vector.load %arg4[%c0_16, %c0_17] : memref<1x128xf32, #tpu.memory_space<vmem>>, vector<1x128xf32>
    %11 = vector.shape_cast %10 : vector<1x128xf32> to vector<1x1x128xf32>
    %c0_18 = arith.constant 0 : index
    %c7_19 = arith.constant 7 : index
    %c0_20 = arith.constant 0 : index
    %12 = vector.load %arg8[%c0_18, %c7_19, %c0_20] : memref<18x25x128xf32, #tpu.memory_space<vmem>>, vector<16x16x128xf32>
    %13 = vector.extract_strided_slice %9 {offsets = [0, 0], sizes = [1, 128], strides = [1, 1]} : vector<9x128xf32> to vector<1x128xf32>
    %14 = vector.shape_cast %13 : vector<1x128xf32> to vector<1x1x128xf32>
    %15 = vector.broadcast %14 : vector<1x1x128xf32> to vector<16x16x128xf32>
    %16 = arith.mulf %12, %15 : vector<16x16x128xf32>
    %17 = vector.broadcast %11 : vector<1x1x128xf32> to vector<16x16x128xf32>
    %18 = arith.addf %16, %17 : vector<16x16x128xf32>
    %c0_21 = arith.constant 0 : index
    %c8_22 = arith.constant 8 : index
    %c0_23 = arith.constant 0 : index
    %19 = vector.load %arg8[%c0_21, %c8_22, %c0_23] : memref<18x25x128xf32, #tpu.memory_space<vmem>>, vector<16x16x128xf32>
    %20 = vector.extract_strided_slice %9 {offsets = [1, 0], sizes = [1, 128], strides = [1, 1]} : vector<9x128xf32> to vector<1x128xf32>
    %21 = vector.shape_cast %20 : vector<1x128xf32> to vector<1x1x128xf32>
    %22 = vector.broadcast %21 : vector<1x1x128xf32> to vector<16x16x128xf32>
    %23 = arith.mulf %19, %22 : vector<16x16x128xf32>
    %24 = arith.addf %18, %23 : vector<16x16x128xf32>
    %c0_24 = arith.constant 0 : index
    %c9 = arith.constant 9 : index
    %c0_25 = arith.constant 0 : index
    %25 = vector.load %arg8[%c0_24, %c9, %c0_25] : memref<18x25x128xf32, #tpu.memory_space<vmem>>, vector<16x16x128xf32>
    %26 = vector.extract_strided_slice %9 {offsets = [2, 0], sizes = [1, 128], strides = [1, 1]} : vector<9x128xf32> to vector<1x128xf32>
    %27 = vector.shape_cast %26 : vector<1x128xf32> to vector<1x1x128xf32>
    %28 = vector.broadcast %27 : vector<1x1x128xf32> to vector<16x16x128xf32>
    %29 = arith.mulf %25, %28 : vector<16x16x128xf32>
    %30 = arith.addf %24, %29 : vector<16x16x128xf32>
    %c1_26 = arith.constant 1 : index
    %c7_27 = arith.constant 7 : index
    %c0_28 = arith.constant 0 : index
    %31 = vector.load %arg8[%c1_26, %c7_27, %c0_28] : memref<18x25x128xf32, #tpu.memory_space<vmem>>, vector<16x16x128xf32>
    %32 = vector.extract_strided_slice %9 {offsets = [3, 0], sizes = [1, 128], strides = [1, 1]} : vector<9x128xf32> to vector<1x128xf32>
    %33 = vector.shape_cast %32 : vector<1x128xf32> to vector<1x1x128xf32>
    %34 = vector.broadcast %33 : vector<1x1x128xf32> to vector<16x16x128xf32>
    %35 = arith.mulf %31, %34 : vector<16x16x128xf32>
    %36 = arith.addf %30, %35 : vector<16x16x128xf32>
    %c1_29 = arith.constant 1 : index
    %c8_30 = arith.constant 8 : index
    %c0_31 = arith.constant 0 : index
    %37 = vector.load %arg8[%c1_29, %c8_30, %c0_31] : memref<18x25x128xf32, #tpu.memory_space<vmem>>, vector<16x16x128xf32>
    %38 = vector.extract_strided_slice %9 {offsets = [4, 0], sizes = [1, 128], strides = [1, 1]} : vector<9x128xf32> to vector<1x128xf32>
    %39 = vector.shape_cast %38 : vector<1x128xf32> to vector<1x1x128xf32>
    %40 = vector.broadcast %39 : vector<1x1x128xf32> to vector<16x16x128xf32>
    %41 = arith.mulf %37, %40 : vector<16x16x128xf32>
    %42 = arith.addf %36, %41 : vector<16x16x128xf32>
    %c1_32 = arith.constant 1 : index
    %c9_33 = arith.constant 9 : index
    %c0_34 = arith.constant 0 : index
    %43 = vector.load %arg8[%c1_32, %c9_33, %c0_34] : memref<18x25x128xf32, #tpu.memory_space<vmem>>, vector<16x16x128xf32>
    %44 = vector.extract_strided_slice %9 {offsets = [5, 0], sizes = [1, 128], strides = [1, 1]} : vector<9x128xf32> to vector<1x128xf32>
    %45 = vector.shape_cast %44 : vector<1x128xf32> to vector<1x1x128xf32>
    %46 = vector.broadcast %45 : vector<1x1x128xf32> to vector<16x16x128xf32>
    %47 = arith.mulf %43, %46 : vector<16x16x128xf32>
    %48 = arith.addf %42, %47 : vector<16x16x128xf32>
    %c2 = arith.constant 2 : index
    %c7_35 = arith.constant 7 : index
    %c0_36 = arith.constant 0 : index
    %49 = vector.load %arg8[%c2, %c7_35, %c0_36] : memref<18x25x128xf32, #tpu.memory_space<vmem>>, vector<16x16x128xf32>
    %50 = vector.extract_strided_slice %9 {offsets = [6, 0], sizes = [1, 128], strides = [1, 1]} : vector<9x128xf32> to vector<1x128xf32>
    %51 = vector.shape_cast %50 : vector<1x128xf32> to vector<1x1x128xf32>
    %52 = vector.broadcast %51 : vector<1x1x128xf32> to vector<16x16x128xf32>
    %53 = arith.mulf %49, %52 : vector<16x16x128xf32>
    %54 = arith.addf %48, %53 : vector<16x16x128xf32>
    %c2_37 = arith.constant 2 : index
    %c8_38 = arith.constant 8 : index
    %c0_39 = arith.constant 0 : index
    %55 = vector.load %arg8[%c2_37, %c8_38, %c0_39] : memref<18x25x128xf32, #tpu.memory_space<vmem>>, vector<16x16x128xf32>
    %56 = vector.extract_strided_slice %9 {offsets = [7, 0], sizes = [1, 128], strides = [1, 1]} : vector<9x128xf32> to vector<1x128xf32>
    %57 = vector.shape_cast %56 : vector<1x128xf32> to vector<1x1x128xf32>
    %58 = vector.broadcast %57 : vector<1x1x128xf32> to vector<16x16x128xf32>
    %59 = arith.mulf %55, %58 : vector<16x16x128xf32>
    %60 = arith.addf %54, %59 : vector<16x16x128xf32>
    %c2_40 = arith.constant 2 : index
    %c9_41 = arith.constant 9 : index
    %c0_42 = arith.constant 0 : index
    %61 = vector.load %arg8[%c2_40, %c9_41, %c0_42] : memref<18x25x128xf32, #tpu.memory_space<vmem>>, vector<16x16x128xf32>
    %62 = vector.extract_strided_slice %9 {offsets = [8, 0], sizes = [1, 128], strides = [1, 1]} : vector<9x128xf32> to vector<1x128xf32>
    %63 = vector.shape_cast %62 : vector<1x128xf32> to vector<1x1x128xf32>
    %64 = vector.broadcast %63 : vector<1x1x128xf32> to vector<16x16x128xf32>
    %65 = arith.mulf %61, %64 : vector<16x16x128xf32>
    %66 = arith.addf %60, %65 : vector<16x16x128xf32>
    %67 = arith.mulf %66, %66 : vector<16x16x128xf32>
    %68 = arith.mulf %66, %67 : vector<16x16x128xf32>
    %cst_43 = arith.constant 4.471500e-02 : f32
    %69 = vector.broadcast %cst_43 : f32 to vector<16x16x128xf32>
    %70 = arith.mulf %69, %68 : vector<16x16x128xf32>
    %71 = arith.addf %66, %70 : vector<16x16x128xf32>
    %cst_44 = arith.constant 0.797884583 : f32
    %72 = vector.broadcast %cst_44 : f32 to vector<16x16x128xf32>
    %73 = arith.mulf %72, %71 : vector<16x16x128xf32>
    %74 = math.tanh %73 : vector<16x16x128xf32>
    %cst_45 = arith.constant 1.000000e+00 : f32
    %75 = vector.broadcast %cst_45 : f32 to vector<16x16x128xf32>
    %76 = arith.addf %75, %74 : vector<16x16x128xf32>
    %cst_46 = arith.constant 5.000000e-01 : f32
    %77 = vector.broadcast %cst_46 : f32 to vector<16x16x128xf32>
    %78 = arith.mulf %77, %76 : vector<16x16x128xf32>
    %79 = arith.mulf %66, %78 : vector<16x16x128xf32>
    %c0_47 = arith.constant 0 : index
    %c0_48 = arith.constant 0 : index
    %80 = vector.load %arg5[%c0_47, %c0_48] : memref<1x128xf32, #tpu.memory_space<vmem>>, vector<1x128xf32>
    %81 = vector.shape_cast %80 : vector<1x128xf32> to vector<1x1x128xf32>
    %82 = vector.broadcast %81 : vector<1x1x128xf32> to vector<16x16x128xf32>
    %83 = arith.mulf %79, %82 : vector<16x16x128xf32>
    %c0_49 = arith.constant 0 : index
    %c0_50 = arith.constant 0 : index
    %84 = vector.load %arg6[%c0_49, %c0_50] : memref<1x128xf32, #tpu.memory_space<vmem>>, vector<1x128xf32>
    %85 = vector.shape_cast %84 : vector<1x128xf32> to vector<1x1x128xf32>
    %86 = vector.broadcast %85 : vector<1x1x128xf32> to vector<16x16x128xf32>
    %87 = arith.addf %83, %86 : vector<16x16x128xf32>
    %c1_51 = arith.constant 1 : index
    %c8_52 = arith.constant 8 : index
    %c0_53 = arith.constant 0 : index
    %88 = vector.load %arg8[%c1_51, %c8_52, %c0_53] : memref<18x25x128xf32, #tpu.memory_space<vmem>>, vector<16x16x128xf32>
    %89 = arith.addf %87, %88 : vector<16x16x128xf32>
    %c0_54 = arith.constant 0 : index
    %c0_55 = arith.constant 0 : index
    %c0_56 = arith.constant 0 : index
    %c0_57 = arith.constant 0 : index
    %90 = vector.load %arg7[%c0_54, %c0_55, %c0_56, %c0_57] : memref<1x16x16x128xf32, #tpu.memory_space<vmem>>, vector<1x16x16x128xf32>
    %91 = vector.shape_cast %90 : vector<1x16x16x128xf32> to vector<16x16x128xf32>
    %92 = vector.shape_cast %89 : vector<16x16x128xf32> to vector<1x16x16x128xf32>
    tpu.vector_store %arg7[%c0_54, %c0_55, %c0_56, %c0_57], %92 {strides = array<i32>} : memref<1x16x16x128xf32, #tpu.memory_space<vmem>>, vector<1x16x16x128xf32>,
    return
  }
  func.func @transform_0(%arg0: i32, %arg1: i32) -> (i32, i32, i32, i32) {
    %c0_i32 = arith.constant 0 : i32
    %c0_i32_0 = arith.constant 0 : i32
    %c0_i32_1 = arith.constant 0 : i32
    return %arg1, %c0_i32, %c0_i32_0, %arg0 : i32, i32, i32, i32
  }
  func.func @transform_1(%arg0: i32, %arg1: i32) -> (i32, i32) {
    %c0_i32 = arith.constant 0 : i32
    %c0_i32_0 = arith.constant 0 : i32
    return %c0_i32, %arg0 : i32, i32
  }
  func.func @transform_2(%arg0: i32, %arg1: i32) -> (i32, i32) {
    %c0_i32 = arith.constant 0 : i32
    %c0_i32_0 = arith.constant 0 : i32
    return %c0_i32, %arg0 : i32, i32
  }
  func.func @transform_3(%arg0: i32, %arg1: i32) -> (i32, i32) {
    %c0_i32 = arith.constant 0 : i32
    %c0_i32_0 = arith.constant 0 : i32
    return %c0_i32, %arg0 : i32, i32
  }
  func.func @transform_4(%arg0: i32, %arg1: i32) -> (i32, i32) {
    %c0_i32 = arith.constant 0 : i32
    %c0_i32_0 = arith.constant 0 : i32
    return %c0_i32, %arg0 : i32, i32
  }
  func.func @transform_5(%arg0: i32, %arg1: i32) -> (i32, i32, i32, i32) {
    %c0_i32 = arith.constant 0 : i32
    %c0_i32_0 = arith.constant 0 : i32
    %c0_i32_1 = arith.constant 0 : i32
    return %arg1, %c0_i32, %c0_i32_0, %arg0 : i32, i32, i32, i32
  }
}

</mosaic_0001>

<bundles_post_ra>
// kernel: residual_convmixer_block.1
= control target key start
LH: loop header
LB: loop body
LE: loop exit
PB: predicated region body
PF: predicated region fallthrough
CT: control target
= control target key end

     0   :  { %s3789_s0 = inlined_call_operand.hbm [shape: f32[2,16,16,256], index: 0, kind: input, shape index: {}]   ;;  %s3790_s1 = inlined_call_operand.vmem [shape: f32[9,256], index: 1, kind: input, shape index: {}]   ;;  %s3791_s2 = inlined_call_operand.vmem [shape: f32[1,256], index: 2, kind: input, shape index: {}]   ;;  %s3792_s3 = inlined_call_operand.vmem [shape: f32[1,256], index: 3, kind: input, shape index: {}]   ;;  %s3793_s4 = inlined_call_operand.vmem [shape: f32[1,256], index: 4, kind: input, shape index: {}]   ;;  %s3794_s5 = inlined_call_operand.hbm [shape: f32[2,16,16,256], index: 5, kind: output, shape index: {}]  }
   0x1   :  { %3807 = sst [smem:[#allocation21_spill]] %s3789_s0 }
   0x2   :  { %10 = vsyncpa [#allocation4], 0 }
   0x3   :  { %12 = vsyncpa [#allocation4 + $0x1], 0 }
   0x4   :  { %13 = vsyncpa [#allocation5], 0 }
   0x5   :  { %15 = vsyncpa [#allocation5 + $0x1], 0  ;;  %s2325_s18 = smov 0   ;;  %s2327_s19 = smov 0  }
   0x6   :  { %s2329_s20 = smov 0   ;;  %s2331_s21 = smov 0  }
   0x7   :  { %s2333_s22 = smov 0   ;;  %s2335_s23 = smov 0  }
   0x8   :  { %s2337_s24 = smov 0   ;;  %s2339_s25 = smov 0  }
   0x9   :  { %s2341_s26 = smov 0   ;;  %s2343_s27 = smov 0  }
   0xa LB: > { %3808 = sst [smem:[#allocation10_spill]] %s2264_s22  ;;  %s1952_s28 = sadd.s32 4294967295, %s2284_s27   ;;  %s2284_s27 = sphi %s2343_s27, %s21_s27   ;;  %s2280_s26 = sphi %s2341_s26, %s3846_s26   ;;  %s2276_s25 = sphi %s2339_s25, %s3845_s25   ;;  %s2272_s24 = sphi %s2337_s24, %s3844_s24   ;;  %s2268_s23 = sphi %s2335_s23, %s3843_s23   ;;  %s2264_s22 = sphi %s2333_s22, %s3836_s22   ;;  %s2260_s21 = sphi %s2331_s21, %s3842_s21   ;;  %s2256_s20 = sphi %s2329_s20, %s3841_s20   ;;  %s2252_s19 = sphi %s2327_s19, %s3840_s19   ;;  %s2248_s18 = sphi %s2325_s18, %s3839_s18  }
   0xb   : > { %s1953_s29 = sadd.s32 4294967294, %s2284_s27   ;;  %s30_s30 = sadd.s32 1, %s2276_s25 }
   0xc   : > { %s33_s6 = sadd.s32 1, %s2280_s26  ;;  %p31_p0 = scmp.ge.s32.totalorder %s30_s30, 2 }
   0xd   : > { %s42_s7 = sadd.s32 1, %s2264_s22  ;;  %p49_p1 = scmp.ne.s32.totalorder %s2264_s22, %s2260_s21 }
   0xe   : > { %p50_p2 = scmp.eq.s32.totalorder %s2284_s27, 0  ;;  %s3848_s30 = smov (%p31_p0, %s30_s30), 0 }
   0xf   : > { %3809 = sst [smem:[#allocation11_spill]] %s3848_s30  ;;  %s3850_s6 = smov (!%p31_p0, %s33_s6), %s2280_s26 }
  0x10   : > { %s37_s8 = ssub.s32 %s2276_s25, %s3848_s30  ;;  %p2393_p3 = por %p50_p2, %p49_p1 }
  0x11   : > { %p35_p4 = scmp.ge.s32.totalorder %s3850_s6, 2  ;;  %p55_p5 = scmp.ne.s32.totalorder %s2260_s21, %s2256_s20 }
  0x12   : > { %p56_p6 = scmp.eq.s32.totalorder %s1952_s28, 0  ;;  %s68_s10 = sadd.s32 1, %s2252_s19 }
  0x13   : > { %s3852_s6 = smov (%p35_p4, %s3850_s6), 0  ;;  %p75_p8 = scmp.ne.s32.totalorder %s2252_s19, %s2248_s18 }
  0x14   : > { %3811 = sst [smem:[#allocation12_spill]] %s3852_s6  ;;  %p2405_p7 = por %p56_p6, %p55_p5 }
  0x15   : > { %s38_s12 = ssub.s32 %s2280_s26, %s3852_s6  ;;  %p185_p9 = scmp.eq.s32.totalorder %s1952_s28, 3 }
  0x16   : > { %s3812_s11 = scalar_select %p2405_p7, 1, 0 }
  0x17   : > { %s39_s13 = sor.u32 %s38_s12, %s37_s8  ;;  %p66_p10 = scmp.eq.s32.totalorder %s38_s12, 0 }
  0x18   : > { %p40_p11 = scmp.eq.s32.totalorder %s39_s13, 0  ;;  %p2415_p12 = por %p75_p8, %p50_p2 }
  0x19   : > { %s2420_s15 = scalar_select %p66_p10, %s2252_s19, %s68_s10  }
  0x1a   : > { %s2423_s16 = scalar_select %p40_p11, %s2264_s22, %s42_s7  }
  0x1b   : > { %3814 = sst [smem:[#allocation13_spill]] %s2420_s15  ;;  %p2428_p13 = por %p185_p9, %p49_p1 }
  0x1c   : > { %3815 = sst [smem:[#allocation14_spill]] %s2423_s16  ;;  %p191_p0 = scmp.eq.s32.totalorder %s1953_s29, 3 }
  0x1d   : > { %s3816_s17 = scalar_select %p2428_p13, 1, 0 }
  0x1e   : > { %p2435_p4 = por %p191_p0, %p55_p5  ;;  %p1955_p2 = scmp.ge.s32.totalorder %s2284_s27, 4 }
  0x1f   : > { %s211_s7 = sand.u32 (!%p1955_p2), 1, %s2264_s22   ;;  %s1957_s8 = sshll.u32 (!%p1955_p2), %s2276_s25, 6 }
  0x20   : > { %s3817_s28 = scalar_select %p2435_p4, 1, 0 }
  0x21   : > { %207 = sbr.rel (%p1955_p2) target bundleno = 71 (0x47), region = 16  ;;  %s1956_s10 = sshll.u32 (!%p1955_p2), %s211_s7, 8 }
  0x22   : > { %3818 = sst [smem:[#allocation15_spill]] %s3817_s28  ;;  %s220_s12 = sadd.s32 (!%p1955_p2), %s2280_s26, %s1957_s8 }
  0x23   : > { %s1958_s13 = sshll.u32 (!%p1955_p2), %s220_s12, 7  ;;  %s215_s6 = scalar_lea.vmem (!%p1955_p2), [#allocation3], %s1956_s10 }
  0x24   : > { %s223_s30 = sshll.u32 (!%p1955_p2), %s215_s6, 4  ;;  %s3819_s0 = sld [smem:[#allocation21_spill]] (!%p1955_p2)  ;;  %s2448_s30 = int_to_ptr.vmem [resolvable:$true] %s223_s30 }
  0x25   : > { %s2450_s28 = scalar_lea.sflag (!%p1955_p2), [#allocation4], %s211_s7 }
  0x2a   : > { %s2446_s15 = scalar_lea.hbm %s3819_s0, %s1958_s13  ;;  %s2146_s10 = scalar_lea.hbm %s3819_s0, 16384 }
  0x2b   : > { %s2142_s22 = scalar_lea.hbm %s2446_s15, 4096  ;;  %p2147_p8 = scmp.lt.u32.totalorder %s2446_s15, %s3819_s0 }
  0x2c   : > { %p2143_p1 = scmp.ne.s32.totalorder %s2446_s15, %s2142_s22  ;;  %p2148_p9 = scmp.lt.u32.totalorder %s2146_s10, %s2142_s22 }
  0x2d   : > { %p2150_p11 = scmp.lt.u32.totalorder %s2142_s22, %s2446_s15 }
  0x2e   : > { %p2144_p5 = pnand %p2143_p1, %p2393_p3  ;;  %p2149_p10 = por %p2148_p9, %p2147_p8 }
  0x30   : > { %p2145_p6 = pneg %p2144_p5  ;;  %p2151_p0 = por %p2150_p11, %p2149_p10 }
  0x32   : > { %p2152_p2 = pnand %p2151_p0, %p2145_p6 }
  0x34   : > { %2155 = shalt.err (!%p2152_p2)
}
  0x35   : > { %s2156_s7 = scalar_lea.vmem %s2448_s30, 4096  ;;  %s2286_s13 = smov [#allocation3]  }
  0x36   : > { %p2157_p1 = scmp.ne.s32.totalorder %s2448_s30, %s2156_s7  ;;  %s2160_s29 = sshll.u32 %s2286_s13, 4  ;;  %s2161_s29 = int_to_ptr.vmem [resolvable:$false] %s2160_s29 }
  0x37   : > { %s2162_s8 = scalar_lea.vmem %s2161_s29, 8192  ;;  %p2163_p13 = scmp.lt.s32.totalorder %s2448_s30, %s2161_s29 }
  0x38   : > { %p2158_p5 = pnand %p2157_p1, %p2393_p3  ;;  %p2164_p7 = scmp.lt.s32.totalorder %s2162_s8, %s2156_s7 }
  0x3a   : > { %p2159_p4 = pneg %p2158_p5  ;;  %p2165_p8 = por %p2164_p7, %p2163_p13 }
  0x3c   : > { %p2166_p9 = pnand %p2165_p8, %p2159_p4 }
  0x3e   : > { %2169 = shalt.err (!%p2166_p9)
}
  0x3f   : > { %s2287_s22 = smov 256   ;;  %s2288_s6 = smov 128  }
  0x40   : > { %s2289_s10 = smov 8   ;;  %232 = sbr.rel (!%p2415_p12) target bundleno = 71 (0x47), region = 24 }
  0x41   : > { %1974 = dma.hbm_to_vmem [thread:$0]  (%p2393_p3), %s2446_s15, 4096, %s2448_s30, %s2450_s28, %s2287_s22, %s2288_s6, %s2289_s10  }
  0x42   : > { %s234_s16 = sand.u32 (%p2415_p12), 1, %s2252_s19   ;;  %s1960_s12 = sshll.u32 (%p2415_p12), %s2280_s26, 3 }
  0x43   : > { %s1959_s7 = sshll.u32 (%p2415_p12), %s234_s16, 4  ;;  %s238_s8 = scalar_lea.vmem (%p2415_p12), %s3790_s1, %s1960_s12 }
  0x44   : > { %v268_v0 = vld [vmem:[%s238_s8] sm:$0xff] (%p2415_p12)  ;;  %v270_v1 = vld [vmem:[%s238_s8 + $0x10] sm:$0xff] (%p2415_p12)  ;;  %s236_s0 = scalar_lea.vmem (%p2415_p12), [#allocation6], %s1959_s7 }
  0x45   : > { %269 = vst [vmem:[%s236_s0] sm:$0xff] (%p2415_p12), %v268_v0  ;;  %271 = vst [vmem:[%s236_s0 + $0x8] sm:$0xff] (%p2415_p12), %v270_v1 }
  0x47 PF: > { %p1961_p3 = scmp.ge.s32.totalorder %s2284_s27, 1  ;;  %p294_p7 = scmp.lt.s32.totalorder %s2284_s27, 5 }
  0x49   : > { %p295_p12 = pnand %p1961_p3, %p294_p7 }
  0x4b   : > { %298 = sbr.rel (%p295_p12) target bundleno = 401 (0x191), region = 74 }
  0x52   : > { %s2484_s30 = sand.u32 1, %s2260_s21   ;;  %p3820_p13 = scmp.ne.s32.totalorder %s3812_s11, 0 }
  0x53   : > { %s1962_s9 = sshll.u32 %s2484_s30, 8  ;;  %s301_s14 = scalar_lea.sflag [#allocation4], %s2484_s30 }
  0x54   : > { %s2490_s15 = scalar_lea.vmem [#allocation3], %s1962_s9 }
  0x55   : > { %2239 = dma.done.wait (%p3820_p13), %s301_s14, 4096  }
  0x56   : > { %2241 = vsyncadd (%p3820_p13), %s301_s14, 4294963200  ;;  %v2290_v2 = vmov 0.0   ;;  %v499_v3 = vlaneseq  ;;  %v2497_v4 = vld [vmem:[%s2490_s15] sm:$0xff]  ;;  %v2500_v5 = vld [vmem:[%s2490_s15 + $0x8] sm:$0xff]  ;;  %s310_s0 = sand.u32 1, %s2248_s18   ;;  %p351_p4 = scmp.lt.s32.totalorder %s2272_s24, 1 }
  0x57   : > { %425 = vst [vmem:[#allocation2 + $0x7] sm:$0xff] %v2290_v2  ;;  %426 = vst [vmem:[#allocation2 + $0xf] sm:$0xff] %v2290_v2  ;;  %v2503_v6 = vld [vmem:[%s2490_s15 + $0x10] sm:$0xff]  ;;  %v2511_v7 = vld [vmem:[%s2490_s15 + $0x18] sm:$0xff]  ;;  %s2545_s18 = sshll.u32 %s310_s0, 4  ;;  %s2882_s14 = scalar_lea.vmem [#allocation7], %s1962_s9 }
  0x58   : > { %427 = vst [vmem:[#allocation2 + $0x17] sm:$0x3] %v2290_v2  ;;  %429 = vst [vmem:[#allocation2 + $0x227] sm:$0xff] %v2290_v2  ;;  %v2514_v8 = vld [vmem:[%s2490_s15 + $0x20] sm:$0xff]  ;;  %v2517_v9 = vld [vmem:[%s2490_s15 + $0x28] sm:$0xff]  ;;  %v2531_v13 = vshrl.u32 %v499_v3, 7 }
  0x59   : > { %430 = vst [vmem:[#allocation2 + $0x22f] sm:$0xff] %v2290_v2  ;;  %431 = vst [vmem:[#allocation2 + $0x237] sm:$0x3] %v2290_v2  ;;  %v2523_v10 = vld [vmem:[%s2490_s15 + $0x30] sm:$0xff]  ;;  %v2526_v11 = vld [vmem:[%s2490_s15 + $0x38] sm:$0xff]  ;;  %s2558_s11 = scalar_select %p351_p4, %s2272_s24, 1 }
  0x5a   : > { %432 = vst [vmem:[#allocation2 + $0x27] sm:$0x1] %v2290_v2  ;;  %433 = vst [vmem:[#allocation2 + $0x47] sm:$0x1] %v2290_v2  ;;  %v2529_v12 = vld [vmem:[%s2490_s15 + $0x40] sm:$0xff]  ;;  %v2537_v14 = vld [vmem:[%s2490_s15 + $0x48] sm:$0xff] }
  0x5b   : > { %434 = vst [vmem:[#allocation2 + $0x67] sm:$0x1] %v2290_v2  ;;  %435 = vst [vmem:[#allocation2 + $0x87] sm:$0x1] %v2290_v2  ;;  %v2540_v15 = vld [vmem:[%s2490_s15 + $0x50] sm:$0xff]  ;;  %v2543_v16 = vld [vmem:[%s2490_s15 + $0x58] sm:$0xff]  ;;  %s2582_s6 = scalar_lea.vmem %s3791_s2, %s2558_s11  ;;  %s2831_s7 = scalar_lea.vmem %s3792_s3, %s2558_s11 }
  0x5c   : > { %436 = vst [vmem:[#allocation2 + $0xa7] sm:$0x1] %v2290_v2  ;;  %437 = vst [vmem:[#allocation2 + $0xc7] sm:$0x1] %v2290_v2  ;;  %v2551_v17 = vld [vmem:[%s2490_s15 + $0x60] sm:$0xff]  ;;  %v373_v18 = vld [vmem:[%s2490_s15 + $0x68] sm:$0xff]  ;;  %s2840_s8 = scalar_lea.vmem %s3793_s4, %s2558_s11 }
  0x5d   : > { %438 = vst [vmem:[#allocation2 + $0xe7] sm:$0x1] %v2290_v2  ;;  %439 = vst [vmem:[#allocation2 + $0x107] sm:$0x1] %v2290_v2  ;;  %v374_v19 = vld [vmem:[%s2490_s15 + $0x70] sm:$0xff]  ;;  %v375_v20 = vld [vmem:[%s2490_s15 + $0x78] sm:$0xff] }
  0x5e   : > { %440 = vst [vmem:[#allocation2 + $0x127] sm:$0x1] %v2290_v2  ;;  %441 = vst [vmem:[#allocation2 + $0x147] sm:$0x1] %v2290_v2  ;;  %v376_v21 = vld [vmem:[%s2490_s15 + $0x80] sm:$0xff]  ;;  %v377_v22 = vld [vmem:[%s2490_s15 + $0x88] sm:$0xff] }
  0x5f   : > { %442 = vst [vmem:[#allocation2 + $0x167] sm:$0x1] %v2290_v2  ;;  %443 = vst [vmem:[#allocation2 + $0x187] sm:$0x1] %v2290_v2  ;;  %v378_v23 = vld [vmem:[%s2490_s15 + $0x90] sm:$0xff]  ;;  %v379_v24 = vld [vmem:[%s2490_s15 + $0x98] sm:$0xff] }
  0x60   : > { %444 = vst [vmem:[#allocation2 + $0x1a7] sm:$0x1] %v2290_v2  ;;  %445 = vst [vmem:[#allocation2 + $0x1c7] sm:$0x1] %v2290_v2  ;;  %v380_v25 = vld [vmem:[%s2490_s15 + $0xa0] sm:$0xff]  ;;  %v501_v26 = vsub.s32 0, %v2531_v13 }
  0x61   : > { %446 = vst [vmem:[#allocation2 + $0x1e7] sm:$0x1] %v2290_v2  ;;  %447 = vst [vmem:[#allocation2 + $0x207] sm:$0x1] %v2290_v2  ;;  %v607_v27 = vsub.s32 1, %v2531_v13  ;;  %v381_v28 = vld [vmem:[%s2490_s15 + $0xa8] sm:$0xff] }
  0x62   : > { %448 = vst [vmem:[#allocation2 + $0x38] sm:$0x1] %v2290_v2  ;;  %449 = vst [vmem:[#allocation2 + $0x58] sm:$0x1] %v2290_v2  ;;  %v382_v29 = vld [vmem:[%s2490_s15 + $0xb0] sm:$0xff]  ;;  %v383_v30 = vld [vmem:[%s2490_s15 + $0xb8] sm:$0xff] }
  0x63   : > { %450 = vst [vmem:[#allocation2 + $0x78] sm:$0x1] %v2290_v2  ;;  %451 = vst [vmem:[#allocation2 + $0x98] sm:$0x1] %v2290_v2  ;;  %v707_v31 = vsub.s32 2, %v2531_v13  ;;  %v807_v32 = vsub.s32 3, %v2531_v13 }
  0x64   : > { %452 = vst [vmem:[#allocation2 + $0xb8] sm:$0x1] %v2290_v2  ;;  %453 = vst [vmem:[#allocation2 + $0xd8] sm:$0x1] %v2290_v2  ;;  %v907_v33 = vsub.s32 4, %v2531_v13  ;;  %v384_v34 = vld [vmem:[%s2490_s15 + $0xc0] sm:$0xff] }
  0x65   : > { %454 = vst [vmem:[#allocation2 + $0xf8] sm:$0x1] %v2290_v2  ;;  %455 = vst [vmem:[#allocation2 + $0x118] sm:$0x1] %v2290_v2  ;;  %v385_v35 = vld [vmem:[%s2490_s15 + $0xc8] sm:$0xff]  ;;  %v386_v36 = vld [vmem:[%s2490_s15 + $0xd0] sm:$0xff] }
  0x66   : > { %456 = vst [vmem:[#allocation2 + $0x138] sm:$0x1] %v2290_v2  ;;  %457 = vst [vmem:[#allocation2 + $0x158] sm:$0x1] %v2290_v2  ;;  %v1007_v37 = vsub.s32 5, %v2531_v13  ;;  %v1108_v38 = vsub.s32 6, %v2531_v13 }
  0x67   : > { %458 = vst [vmem:[#allocation2 + $0x178] sm:$0x1] %v2290_v2  ;;  %459 = vst [vmem:[#allocation2 + $0x198] sm:$0x1] %v2290_v2  ;;  %v1208_v39 = vsub.s32 7, %v2531_v13  ;;  %v387_v40 = vld [vmem:[%s2490_s15 + $0xd8] sm:$0xff] }
  0x68   : > { %460 = vst [vmem:[#allocation2 + $0x1b8] sm:$0x1] %v2290_v2  ;;  %461 = vst [vmem:[#allocation2 + $0x1d8] sm:$0x1] %v2290_v2  ;;  %v388_v41 = vld [vmem:[%s2490_s15 + $0xe0] sm:$0xff]  ;;  %v389_v42 = vld [vmem:[%s2490_s15 + $0xe8] sm:$0xff] }
  0x69   : > { %462 = vst [vmem:[#allocation2 + $0x1f8] sm:$0x1] %v2290_v2  ;;  %463 = vst [vmem:[#allocation2 + $0x218] sm:$0x1] %v2290_v2  ;;  %v390_v43 = vld [vmem:[%s2490_s15 + $0xf0] sm:$0xff]  ;;  %v391_v44 = vld [vmem:[%s2490_s15 + $0xf8] sm:$0xff] }
  0x6a   : > { %3821 = vst [vmem:[#allocation16_spill] sm:$0xff] %v2497_v4  ;;  %3822 = vst [vmem:[#allocation17_spill] sm:$0xff] %v2500_v5  ;;  %s2593_s10 = scalar_lea.vmem [#allocation6], %s2545_s18  ;;  %v2600_v47 = vld [vmem:[%s2582_s6] ss:$0 sm:$0xff]  ;;  %v573_v49 = vld [vmem:[#allocation2 + $0x8] sm:$0xff] }
  0x6b   : > { %393 = vst [vmem:[#allocation2 + $0x28] sm:$0xff] %v2497_v4  ;;  %394 = vst [vmem:[#allocation2 + $0x30] sm:$0xff] %v2500_v5  ;;  %v464_v45 = vld [vmem:[%s2593_s10] sm:$0xff]  ;;  %v2597_v46 = vld [vmem:[%s2593_s10 + $0x8] ss:$0 sm:$0xff]  ;;  %s1970_s9 = sshll.u32 %s2268_s23, 6 }
  0x6c   : > { %395 = vst [vmem:[#allocation2 + $0x48] sm:$0xff] %v2503_v6  ;;  %396 = vst [vmem:[#allocation2 + $0x50] sm:$0xff] %v2511_v7  ;;  %v2602_v48 = vrot.slane %v464_v45, %v501_v26  ;;  %v2604_v50 = vrot.slane %v464_v45, %v607_v27  ;;  %v2606_v51 = vrot.slane %v464_v45, %v707_v31  ;;  %v673_v53 = vld [vmem:[#allocation2 + $0x9] sm:$0xff]  ;;  %s1816_s15 = sadd.s32 %s2272_s24, %s1970_s9  ;;  %s1819_s18 = sshll.u32 %s2882_s14, 4  ;;  %s3727_s18 = int_to_ptr.vmem [resolvable:$true] %s1819_s18 }
  0x6d   : > { %397 = vst [vmem:[#allocation2 + $0x68] sm:$0xff] %v2514_v8  ;;  %398 = vst [vmem:[#allocation2 + $0x70] sm:$0xff] %v2517_v9  ;;  %v2608_v52 = vrot.slane %v464_v45, %v807_v32  ;;  %v2610_v55 = vrot.slane %v464_v45, %v907_v33  ;;  %v2612_v57 = vrot.slane %v464_v45, %v1007_v37  ;;  %s1971_s0 = sshll.u32 %s1816_s15, 7  ;;  %s1805_s24 = scalar_lea.sflag [#allocation5], %s2484_s30 }
  0x6e   : > { %399 = vst [vmem:[#allocation2 + $0x88] sm:$0xff] %v2523_v10  ;;  %400 = vst [vmem:[#allocation2 + $0x90] sm:$0xff] %v2526_v11  ;;  %v2614_v58 = vrot.slane %v464_v45, %v1108_v38  ;;  %v2616_v59 = vrot.slane %v464_v45, %v1208_v39  ;;  %v503_v60 = vmul.f32 0.0, %v2602_v48  ;;  %v609_v61 = vmul.f32 %v2604_v50, %v573_v49  ;;  %s3725_s23 = scalar_lea.hbm %s3794_s5, %s1971_s0  ;;  %s2170_s22 = scalar_lea.vmem %s3727_s18, 4096 }
  0x6f   : > { %401 = vst [vmem:[#allocation2 + $0xa8] sm:$0xff] %v2529_v12  ;;  %3823 = vst [vmem:[#allocation18_spill] sm:$0xff] %v2540_v15  ;;  %v709_v62 = vmul.f32 %v2606_v51, %v673_v53  ;;  %v909_v2 = vmul.f32 %v2610_v55, %v2497_v4  ;;  %v911_v45 = vmul.f32 %v2610_v55, %v2503_v6  ;;  %p2171_p6 = scmp.ne.s32.totalorder %s3727_s18, %s2170_s22  ;;  %p3831_p10 = scmp.ne.s32.totalorder %s3816_s17, 0 }
  0x70   : > { %3824 = vst [vmem:[#allocation19_spill] sm:$0xff] %v2543_v16  ;;  %402 = vst [vmem:[#allocation2 + $0xb0] sm:$0xff] %v2537_v14 }
  0x71   : > { %403 = vst [vmem:[#allocation2 + $0xc8] sm:$0xff] %v2540_v15  ;;  %404 = vst [vmem:[#allocation2 + $0xd0] sm:$0xff] %v2543_v16  ;;  %p2172_p11 = pnand %p2171_p6, %p3831_p10 }
  0x72   : > { %3825 = vst [vmem:[#allocation20_spill] sm:$0xff] %v2551_v17  ;;  %405 = vst [vmem:[#allocation2 + $0xe8] sm:$0xff] %v2551_v17  ;;  %v773_v54 = vld [vmem:[#allocation2 + $0x27] sm:$0xff]  ;;  %v974_v26 = vld [vmem:[#allocation2 + $0x31] sm:$0xff] }
  0x73   : > { %406 = vst [vmem:[#allocation2 + $0xf0] sm:$0xff] %v373_v18  ;;  %407 = vst [vmem:[#allocation2 + $0x108] sm:$0xff] %v374_v19  ;;  %v973_v56 = vld [vmem:[#allocation2 + $0x29] sm:$0xff]  ;;  %v809_v63 = vmul.f32 %v2608_v52, %v773_v54  ;;  %v2628_v18 = vmul.f32 %v2616_v59, %v2503_v6  ;;  %v2644_v32 = vld [vmem:[#allocation2 + $0x51] sm:$0xff]  ;;  %v505_v39 = vmul.f32 %v773_v54, %v2602_v48  ;;  %p2173_p0 = pneg %p2172_p11 }
  0x74   : > { %408 = vst [vmem:[#allocation2 + $0x110] sm:$0xff] %v375_v20  ;;  %409 = vst [vmem:[#allocation2 + $0x128] sm:$0xff] %v376_v21  ;;  %v1074_v0 = vld [vmem:[#allocation2 + $0x47] sm:$0xff]  ;;  %v1009_v3 = vmul.f32 %v2612_v57, %v973_v56  ;;  %v574_v19 = vld [vmem:[#allocation2 + $0x10] sm:$0xff]  ;;  %v541_v21 = vadd.f32 %v2600_v47, %v503_v60  ;;  %v1212_v54 = vmul.f32 %v2616_v59, %v2514_v8 }
  0x75   : > { %410 = vst [vmem:[#allocation2 + $0x130] sm:$0xff] %v377_v22  ;;  %411 = vst [vmem:[#allocation2 + $0x148] sm:$0xff] %v378_v23  ;;  %v1274_v1 = vld [vmem:[#allocation2 + $0x49] sm:$0xff]  ;;  %v1110_v13 = vmul.f32 %v2614_v58, %v1074_v0  ;;  %v674_v20 = vld [vmem:[#allocation2 + $0x11] sm:$0xff]  ;;  %v610_v23 = vmul.f32 %v2604_v50, %v574_v19  ;;  %v543_v53 = vadd.f32 %v2600_v47, %v505_v39 }
  0x76   : > { %412 = vst [vmem:[#allocation2 + $0x150] sm:$0xff] %v379_v24  ;;  %413 = vst [vmem:[#allocation2 + $0x168] sm:$0xff] %v380_v25  ;;  %v2632_v22 = vmul.f32 %v2597_v46, %v1274_v1  ;;  %v710_v24 = vmul.f32 %v2606_v51, %v674_v20  ;;  %v774_v25 = vld [vmem:[#allocation2 + $0x2f] sm:$0xff]  ;;  %v641_v33 = vadd.f32 %v609_v61, %v541_v21  ;;  %v2650_v37 = vld [vmem:[#allocation2 + $0x67] sm:$0xff] }
  0x77   : > { %414 = vst [vmem:[#allocation2 + $0x170] sm:$0xff] %v381_v28  ;;  %415 = vst [vmem:[#allocation2 + $0x188] sm:$0xff] %v382_v29  ;;  %v2636_v27 = vld [vmem:[#allocation2 + $0x4f] sm:$0xff]  ;;  %v810_v28 = vmul.f32 %v2608_v52, %v774_v25  ;;  %v910_v29 = vmul.f32 %v2610_v55, %v2500_v5  ;;  %v1011_v49 = vmul.f32 %v1274_v1, %v2612_v57 }
  0x78   : > { %416 = vst [vmem:[#allocation2 + $0x190] sm:$0xff] %v383_v30  ;;  %417 = vst [vmem:[#allocation2 + $0x1a8] sm:$0xff] %v384_v34  ;;  %v1010_v30 = vmul.f32 %v2612_v57, %v974_v26  ;;  %v1111_v31 = vmul.f32 %v2614_v58, %v2636_v27  ;;  %v642_v34 = vadd.f32 %v610_v23, %v541_v21  ;;  %v2652_v38 = vld [vmem:[#allocation2 + $0x69] sm:$0xff]  ;;  %v2676_v23 = vld [vmem:[#allocation2 + $0x71] sm:$0xff] }
  0x79   : > { %418 = vst [vmem:[#allocation2 + $0x1b0] sm:$0xff] %v385_v35  ;;  %419 = vst [vmem:[#allocation2 + $0x1c8] sm:$0xff] %v386_v36  ;;  %v1211_v35 = vmul.f32 %v2616_v59, %v2511_v7  ;;  %v1311_v36 = vmul.f32 %v2597_v46, %v2644_v32  ;;  %v1112_v60 = vmul.f32 %v2614_v58, %v2650_v37  ;;  %v2674_v21 = vld [vmem:[#allocation2 + $0x6f] sm:$0xff] }
  0x7a   : > { %420 = vst [vmem:[#allocation2 + $0x1d0] sm:$0xff] %v387_v40  ;;  %421 = vst [vmem:[#allocation2 + $0x1e8] sm:$0xff] %v388_v41  ;;  %v611_v40 = vmul.f32 %v2604_v50, %v2497_v4  ;;  %v711_v41 = vmul.f32 %v973_v56, %v2606_v51  ;;  %v2669_v56 = vmul.f32 %v2597_v46, %v2652_v38 }
  0x7b   : > { %422 = vst [vmem:[#allocation2 + $0x1f0] sm:$0xff] %v389_v42  ;;  %423 = vst [vmem:[#allocation2 + $0x208] sm:$0xff] %v390_v43  ;;  %v811_v42 = vmul.f32 %v1074_v0, %v2608_v52  ;;  %v741_v43 = vadd.f32 %v709_v62, %v641_v33  ;;  %v506_v19 = vmul.f32 %v774_v25, %v2602_v48 }
  0x7c   : > { %424 = vst [vmem:[#allocation2 + $0x210] sm:$0xff] %v391_v44  ;;  %v742_v44 = vadd.f32 %v710_v24, %v642_v34  ;;  %v612_v20 = vmul.f32 %v2604_v50, %v2500_v5  ;;  %v643_v24 = vadd.f32 %v611_v40, %v543_v53  ;;  %v712_v33 = vmul.f32 %v974_v26, %v2606_v51 }
  0x7d   : > { %v841_v61 = vadd.f32 %v809_v63, %v741_v43  ;;  %v812_v34 = vmul.f32 %v2636_v27, %v2608_v52  ;;  %v912_v39 = vmul.f32 %v2610_v55, %v2511_v7  ;;  %v544_v25 = vadd.f32 %v2600_v47, %v506_v19 }
  0x7e   : > { %v842_v62 = vadd.f32 %v810_v28, %v742_v44  ;;  %v1012_v43 = vmul.f32 %v2644_v32, %v2612_v57  ;;  %v743_v44 = vadd.f32 %v711_v41, %v643_v24  ;;  %v1113_v17 = vmul.f32 %v2614_v58, %v2674_v21 }
  0x7f   : > { %v941_v63 = vadd.f32 %v909_v2, %v841_v61  ;;  %v1213_v26 = vmul.f32 %v2616_v59, %v2517_v9  ;;  %v2692_v40 = vmul.f32 %v2597_v46, %v2676_v23  ;;  %v644_v2 = vadd.f32 %v612_v20, %v544_v25  ;;  %v2695_v61 = vld [vmem:[#allocation2 + $0x87] sm:$0xff] }
  0x80   : > { %v942_v28 = vadd.f32 %v910_v29, %v842_v62  ;;  %v507_v29 = vmul.f32 %v1074_v0, %v2602_v48  ;;  %v843_v62 = vadd.f32 %v811_v42, %v743_v44  ;;  %v613_v41 = vmul.f32 %v2604_v50, %v2503_v6 }
  0x81   : > { %v1041_v53 = vadd.f32 %v1009_v3, %v941_v63  ;;  %v713_v19 = vmul.f32 %v1274_v1, %v2606_v51  ;;  %v813_v24 = vmul.f32 %v2650_v37, %v2608_v52  ;;  %v744_v4 = vadd.f32 %v712_v33, %v644_v2 }
  0x82   : > { %v1042_v16 = vadd.f32 %v1010_v30, %v942_v28  ;;  %v545_v3 = vadd.f32 %v2600_v47, %v507_v29  ;;  %v2703_v30 = vld [vmem:[#allocation2 + $0x89] sm:$0xff]  ;;  %v943_v20 = vadd.f32 %v911_v45, %v843_v62  ;;  %v913_v0 = vmul.f32 %v2610_v55, %v2514_v8 }
  0x83   : > { %v1142_v15 = vadd.f32 %v1110_v13, %v1041_v53  ;;  %v1013_v42 = vmul.f32 %v2652_v38, %v2612_v57  ;;  %v1114_v1 = vmul.f32 %v2614_v58, %v2695_v61  ;;  %v844_v13 = vadd.f32 %v812_v34, %v744_v4  ;;  %v2732_v34 = vld [vmem:[#allocation2 + $0x8f] sm:$0xff] }
  0x84   : > { %v1143_v5 = vadd.f32 %v1111_v31, %v1042_v16  ;;  %v645_v16 = vadd.f32 %v613_v41, %v545_v3  ;;  %v1043_v31 = vadd.f32 %v1011_v49, %v943_v20  ;;  %v1214_v33 = vmul.f32 %v2616_v59, %v2523_v10  ;;  %v2740_v20 = vld [vmem:[#allocation2 + $0x91] sm:$0xff] }
  0x85   : > { %v1242_v63 = vadd.f32 %v2628_v18, %v1142_v15  ;;  %v1314_v45 = vmul.f32 %v2597_v46, %v2703_v30  ;;  %v508_v25 = vmul.f32 %v2636_v27, %v2602_v48  ;;  %v944_v2 = vadd.f32 %v912_v39, %v844_v13 }
  0x86   : > { %v1243_v28 = vadd.f32 %v1211_v35, %v1143_v5  ;;  %v745_v15 = vadd.f32 %v713_v19, %v645_v16  ;;  %v1144_v5 = vadd.f32 %v1112_v60, %v1043_v31  ;;  %v614_v18 = vmul.f32 %v2604_v50, %v2511_v7 }
  0x87   : > { %v2719_v44 = vadd.f32 %v2632_v22, %v1242_v63  ;;  %v546_v4 = vadd.f32 %v2600_v47, %v508_v25  ;;  %v714_v35 = vmul.f32 %v2644_v32, %v2606_v51  ;;  %v1044_v27 = vadd.f32 %v1012_v43, %v944_v2 }
  0x88   : > { %v2721_v53 = vadd.f32 %v1311_v36, %v1243_v28  ;;  %v845_v36 = vadd.f32 %v813_v24, %v745_v15  ;;  %v1244_v39 = vadd.f32 %v1212_v54, %v1144_v5  ;;  %v814_v29 = vmul.f32 %v2674_v21, %v2608_v52 }
  0x89   : > { %v1374_v49 = vmul.f32 %v2719_v44, %v2719_v44  ;;  %v646_v60 = vadd.f32 %v614_v18, %v546_v4  ;;  %v914_v62 = vmul.f32 %v2610_v55, %v2517_v9  ;;  %v1145_v19 = vadd.f32 %v1113_v17, %v1044_v27 }
  0x8a   : > { %v1375_v22 = vmul.f32 %v2721_v53, %v2721_v53  ;;  %v945_v3 = vadd.f32 %v913_v0, %v845_v36  ;;  %v2743_v43 = vadd.f32 %v2669_v56, %v1244_v39  ;;  %v1014_v54 = vmul.f32 %v2676_v23, %v2612_v57 }
  0x8b   : > { %v1406_v32 = vmul.f32 %v1374_v49, %v2719_v44  ;;  %v746_v24 = vadd.f32 %v714_v35, %v646_v60  ;;  %v1115_v63 = vmul.f32 %v2614_v58, %v2732_v34  ;;  %v1245_v16 = vadd.f32 %v1213_v26, %v1145_v19 }
  0x8c   : > { %v1407_v41 = vmul.f32 %v1375_v22, %v2721_v53  ;;  %v1045_v31 = vadd.f32 %v1013_v42, %v945_v3  ;;  %v1376_v17 = vmul.f32 %v2743_v43, %v2743_v43  ;;  %v1215_v25 = vmul.f32 %v2616_v59, %v2526_v11  ;;  %v2778_v3 = vld [vmem:[#allocation2 + $0xa9] sm:$0xff] }
  0x8d   : > { %v1438_v28 = vmul.f32 0.044715, %v1406_v32  ;;  %v846_v0 = vadd.f32 %v814_v29, %v746_v24  ;;  %v1315_v56 = vmul.f32 %v2597_v46, %v2740_v20  ;;  %v2758_v5 = vadd.f32 %v2692_v40, %v1245_v16  ;;  %v2775_v32 = vld [vmem:[#allocation2 + $0xa7] sm:$0xff] }
  0x8e   : > { %v1439_v13 = vmul.f32 0.044715, %v1407_v41  ;;  %v1146_v4 = vadd.f32 %v1114_v1, %v1045_v31  ;;  %v1408_v26 = vmul.f32 %v1376_v17, %v2743_v43  ;;  %v509_v18 = vmul.f32 %v2650_v37, %v2602_v48 }
  0x8f   : > { %v1470_v2 = vadd.f32 %v1438_v28, %v2719_v44  ;;  %v946_v42 = vadd.f32 %v914_v62, %v846_v0  ;;  %v615_v35 = vmul.f32 %v2604_v50, %v2514_v8  ;;  %v1377_v27 = vmul.f32 %v2758_v5, %v2758_v5 }
  0x90   : > { %v1471_v15 = vadd.f32 %v1439_v13, %v2721_v53  ;;  %v1246_v36 = vadd.f32 %v1214_v33, %v1146_v4  ;;  %v1440_v39 = vmul.f32 0.044715, %v1408_v26  ;;  %v547_v40 = vadd.f32 %v2600_v47, %v509_v18 }
  0x91   : > { %v1502_v49 = vmul.f32 0.7978846, %v1470_v2  ;;  %v1046_v60 = vadd.f32 %v1014_v54, %v946_v42  ;;  %v715_v1 = vmul.f32 %v2652_v38, %v2606_v51  ;;  %v1409_v29 = vmul.f32 %v1377_v27, %v2758_v5 }
  0x92   : > { %v1503_v22 = vmul.f32 0.7978846, %v1471_v15  ;;  %v2771_v37 = vadd.f32 %v1314_v45, %v1246_v36  ;;  %v815_v62 = vmul.f32 %v2695_v61, %v2608_v52  ;;  %v1472_v33 = vadd.f32 %v1440_v39, %v2743_v43 }
  0x93   : > { %2070 = vtanh.f32 %v1502_v49  ;;  %v1147_v41 = vadd.f32 %v1115_v63, %v1046_v60  ;;  %v647_v19 = vadd.f32 %v615_v35, %v547_v40  ;;  %v1441_v24 = vmul.f32 0.044715, %v1409_v29  ;;  %v2802_v49 = vld [vmem:[#allocation2 + $0xaf] sm:$0xff] }
  0x94   : > { %2072 = vtanh.f32 %v1503_v22  ;;  %v1378_v38 = vmul.f32 %v2771_v37, %v2771_v37  ;;  %v915_v45 = vmul.f32 %v2610_v55, %v2523_v10  ;;  %v1015_v54 = vmul.f32 %v2703_v30, %v2612_v57 }
  0x95   : > { %v1504_v28 = vmul.f32 0.7978846, %v1472_v33  ;;  %v1247_v13 = vadd.f32 %v1215_v25, %v1147_v41  ;;  %v747_v16 = vadd.f32 %v715_v1, %v647_v19  ;;  %v1116_v31 = vmul.f32 %v2614_v58, %v2775_v32 }
  0x96   : > { %v1473_v63 = vadd.f32 %v1441_v24, %v2758_v5  ;;  %v1410_v17 = vmul.f32 %v1378_v38, %v2771_v37  ;;  %v1216_v0 = vmul.f32 %v2616_v59, %v2529_v12  ;;  %v1316_v2 = vmul.f32 %v2597_v46, %v2778_v3 }
  0x97   : > { %2074 = vtanh.f32 %v1504_v28  ;;  %v2794_v15 = vadd.f32 %v1315_v56, %v1247_v13  ;;  %v847_v4 = vadd.f32 %v815_v62, %v747_v16  ;;  %v510_v25 = vmul.f32 %v2674_v21, %v2602_v48  ;;  %v2809_v21 = vld [vmem:[#allocation2 + $0xb1] sm:$0xff] }
  0x98   : > { %v1505_v26 = vmul.f32 0.7978846, %v1473_v63  ;;  %v1442_v42 = vmul.f32 0.044715, %v1410_v17  ;;  %v616_v18 = vmul.f32 %v2604_v50, %v2517_v9  ;;  %v716_v35 = vmul.f32 %v2676_v23, %v2606_v51 }
  0x99   : > { %v1379_v22 = vmul.f32 %v2794_v15, %v2794_v15  ;;  %v947_v27 = vadd.f32 %v915_v45, %v847_v4  ;;  %v548_v56 = vadd.f32 %v2600_v47, %v510_v25  ;;  %v816_v36 = vmul.f32 %v2732_v34, %v2608_v52 }
  0x9a   : > { %2076 = vtanh.f32 %v1505_v26  ;;  %v1474_v39 = vadd.f32 %v1442_v42, %v2771_v37  ;;  %v916_v23 = vmul.f32 %v2610_v55, %v2526_v11  ;;  %v1016_v60 = vmul.f32 %v2740_v20, %v2612_v57 }
  0x9b   : > { %v1411_v40 = vmul.f32 %v1379_v22, %v2794_v15  ;;  %v1047_v1 = vadd.f32 %v1015_v54, %v947_v27  ;;  %v648_v29 = vadd.f32 %v616_v18, %v548_v56  ;;  %v1117_v62 = vmul.f32 %v2614_v58, %v2802_v49 }
  0x9c   : > { %v1506_v41 = vmul.f32 0.7978846, %v1474_v39  ;;  %v1217_v19 = vmul.f32 %v2616_v59, %v2537_v14  ;;  %v2823_v24 = vmul.f32 %v2597_v46, %v2809_v21  ;;  %v511_v38 = vmul.f32 %v2695_v61, %v2602_v48 }
  0x9d   : > { %v2071_v33 = vpop.eup %2070  ;;  %v1443_v28 = vmul.f32 0.044715, %v1411_v40  ;;  %v1148_v13 = vadd.f32 %v1116_v31, %v1047_v1  ;;  %v748_v16 = vadd.f32 %v716_v35, %v648_v29  ;;  %v617_v4 = vmul.f32 %v2604_v50, %v2523_v10  ;;  %v2844_v31 = vld [vmem:[%s2831_s7] ss:$0 sm:$0xff] }
  0x9e   : > { %v2073_v45 = vpop.eup %2072  ;;  %v1566_v54 = vadd.f32 1.0, %v2071_v33  ;;  %2078 = vtanh.f32 %v1506_v41  ;;  %v549_v17 = vadd.f32 %v2600_v47, %v511_v38  ;;  %v717_v22 = vmul.f32 %v2703_v30, %v2606_v51  ;;  %v2854_v33 = vld [vmem:[%s2840_s8] ss:$0 sm:$0xff] }
  0x9f   : > { %v1567_v63 = vadd.f32 1.0, %v2073_v45  ;;  %v1475_v25 = vadd.f32 %v1443_v28, %v2794_v15  ;;  %v1248_v26 = vadd.f32 %v1216_v0, %v1148_v13  ;;  %v848_v42 = vadd.f32 %v816_v36, %v748_v16 }
  0xa0   : > { %v1598_v61 = vmul.f32 0.5, %v1566_v54  ;;  %v649_v35 = vadd.f32 %v617_v4, %v549_v17  ;;  %v817_v27 = vmul.f32 %v2775_v32, %v2608_v52  ;;  %v917_v38 = vmul.f32 %v2610_v55, %v2529_v12  ;;  %v2862_v54 = vld [vmem:[#allocation2 + $0xc7] sm:$0xff] }
  0xa1   : > { %v1599_v18 = vmul.f32 0.5, %v1567_v63  ;;  %v2075_v56 = vpop.eup %2074  ;;  %v1507_v40 = vmul.f32 0.7978846, %v1475_v25  ;;  %v2851_v1 = vadd.f32 %v1316_v2, %v1248_v26  ;;  %v948_v29 = vadd.f32 %v916_v23, %v848_v42  ;;  %v3826_v42 = vld [vmem:[#allocation16_spill] sm:$0xff] }
  0xa2   : > { %v1630_v39 = vmul.f32 %v1598_v61, %v2719_v44  ;;  %v1568_v36 = vadd.f32 1.0, %v2075_v56  ;;  %v749_v41 = vadd.f32 %v717_v22, %v649_v35  ;;  %v1118_v26 = vmul.f32 %v2614_v58, %v2862_v54  ;;  %v2874_v56 = vld [vmem:[#allocation2 + $0xc9] sm:$0xff] }
  0xa3   : > { %v1631_v0 = vmul.f32 %v1599_v18, %v2721_v53  ;;  %2080 = vtanh.f32 %v1507_v40  ;;  %v1380_v45 = vmul.f32 %v2851_v1, %v2851_v1  ;;  %v1048_v44 = vadd.f32 %v1016_v60, %v948_v29  ;;  %v3827_v40 = vld [vmem:[#allocation17_spill] sm:$0xff] }
  0xa4   : > { %v1669_v30 = vmul.f32 %v2844_v31, %v1630_v39  ;;  %v2077_v2 = vpop.eup %2076  ;;  %v1600_v28 = vmul.f32 0.5, %v1568_v36  ;;  %v849_v13 = vadd.f32 %v817_v27, %v749_v41  ;;  %v1017_v53 = vmul.f32 %v2778_v3, %v2612_v57  ;;  %v3828_v36 = vld [vmem:[#allocation18_spill] sm:$0xff] }
  0xa5   : > { %v1670_v23 = vmul.f32 %v2844_v31, %v1631_v0  ;;  %v1569_v63 = vadd.f32 1.0, %v2077_v2  ;;  %v1412_v17 = vmul.f32 %v1380_v45, %v2851_v1  ;;  %v1149_v4 = vadd.f32 %v1117_v62, %v1048_v44 }
  0xa6   : > { %v1708_v16 = vadd.f32 %v2854_v33, %v1669_v30  ;;  %v1632_v60 = vmul.f32 %v1600_v28, %v2743_v43  ;;  %v949_v25 = vadd.f32 %v917_v38, %v849_v13  ;;  %v1218_v43 = vmul.f32 %v2616_v59, %v3828_v36 }
  0xa7   : > { %v1709_v61 = vadd.f32 %v2854_v33, %v1670_v23  ;;  %v1601_v35 = vmul.f32 0.5, %v1569_v63  ;;  %v1444_v22 = vmul.f32 0.044715, %v1412_v17  ;;  %v1249_v27 = vadd.f32 %v1217_v19, %v1149_v4 }
  0xa8   : > { %v1740_v18 = vadd.f32 %v1708_v16, %v3826_v42  ;;  %v2079_v39 = vpop.eup %2078  ;;  %v1671_v62 = vmul.f32 %v2844_v31, %v1632_v60  ;;  %v1049_v0 = vadd.f32 %v1017_v53, %v949_v25  ;;  %v1318_v2 = vmul.f32 %v2597_v46, %v2874_v56 }
  0xa9   : > { %v1741_v29 = vadd.f32 %v1709_v61, %v3827_v40  ;;  %v1633_v41 = vmul.f32 %v1601_v35, %v2758_v5  ;;  %v1570_v19 = vadd.f32 1.0, %v2079_v39  ;;  %v1476_v38 = vadd.f32 %v1444_v22, %v2851_v1 }
  0xaa   : > { %1772 = vst [vmem:[%s2882_s14] sm:$0xff] %v1740_v18  ;;  %v2888_v30 = vadd.f32 %v2823_v24, %v1249_v27  ;;  %v1710_v45 = vadd.f32 %v2854_v33, %v1671_v62  ;;  %v1150_v44 = vadd.f32 %v1118_v26, %v1049_v0  ;;  %v512_v23 = vmul.f32 %v2732_v34, %v2602_v48 }
  0xab   : > { %1773 = vst [vmem:[%s2882_s14 + $0x8] sm:$0xff] %v1741_v29  ;;  %v1672_v28 = vmul.f32 %v2844_v31, %v1633_v41  ;;  %v1602_v5 = vmul.f32 0.5, %v1570_v19  ;;  %v1508_v13 = vmul.f32 0.7978846, %v1476_v38  ;;  %v618_v17 = vmul.f32 %v2604_v50, %v2526_v11  ;;  %v2924_v41 = vld [vmem:[#allocation2 + $0xcf] sm:$0xff] }
  0xac   : > { %v1381_v53 = vmul.f32 %v2888_v30, %v2888_v30  ;;  %v1742_v24 = vadd.f32 %v1710_v45, %v2503_v6  ;;  %v1250_v16 = vadd.f32 %v1218_v43, %v1150_v44  ;;  %v550_v63 = vadd.f32 %v2600_v47, %v512_v23 }
  0xad   : > { %v2081_v4 = vpop.eup %2080  ;;  %v1711_v61 = vadd.f32 %v2854_v33, %v1672_v28  ;;  %v1634_v34 = vmul.f32 %v1602_v5, %v2771_v37  ;;  %2082 = vtanh.f32 %v1508_v13  ;;  %v718_v42 = vmul.f32 %v2740_v20, %v2606_v51  ;;  %v3829_v5 = vld [vmem:[#allocation19_spill] sm:$0xff] }
  0xae   : > { %v1413_v60 = vmul.f32 %v1381_v53, %v2888_v30  ;;  %1774 = vst [vmem:[%s2882_s14 + $0x10] sm:$0xff] %v1742_v24  ;;  %v1571_v25 = vadd.f32 1.0, %v2081_v4  ;;  %v2907_v26 = vadd.f32 %v1318_v2, %v1250_v16  ;;  %v650_v6 = vadd.f32 %v618_v17, %v550_v63  ;;  %v2946_v17 = vld [vmem:[#allocation2 + $0xe7] sm:$0xff] }
  0xaf   : > { %v1743_v18 = vadd.f32 %v1711_v61, %v2511_v7  ;;  %v1673_v35 = vmul.f32 %v2844_v31, %v1634_v34  ;;  %v818_v37 = vmul.f32 %v2802_v49, %v2608_v52  ;;  %v918_v29 = vmul.f32 %v2610_v55, %v2537_v14  ;;  %v2929_v14 = vld [vmem:[#allocation2 + $0xd1] sm:$0xff] }
  0xb0   : > { %v1445_v22 = vmul.f32 0.044715, %v1413_v60  ;;  %v1603_v27 = vmul.f32 0.5, %v1571_v25  ;;  %v1382_v39 = vmul.f32 %v2907_v26, %v2907_v26  ;;  %v750_v40 = vadd.f32 %v718_v42, %v650_v6 }
  0xb1   : > { %1775 = vst [vmem:[%s2882_s14 + $0x18] sm:$0xff] %v1743_v18  ;;  %v1712_v20 = vadd.f32 %v2854_v33, %v1673_v35  ;;  %v1018_v45 = vmul.f32 %v2809_v21, %v2612_v57  ;;  %v513_v44 = vmul.f32 %v2775_v32, %v2602_v48  ;;  %v619_v28 = vmul.f32 %v2604_v50, %v2529_v12 }
  0xb2   : > { %v1477_v7 = vadd.f32 %v1445_v22, %v2888_v30  ;;  %v1635_v62 = vmul.f32 %v1603_v27, %v2794_v15  ;;  %v1414_v0 = vmul.f32 %v1382_v39, %v2907_v26  ;;  %v850_v43 = vadd.f32 %v818_v37, %v750_v40  ;;  %v2955_v22 = vld [vmem:[#allocation2 + $0xe9] sm:$0xff] }
  0xb3   : > { %v1744_v19 = vadd.f32 %v1712_v20, %v2514_v8  ;;  %v1119_v8 = vmul.f32 %v2614_v58, %v2924_v41  ;;  %v1219_v13 = vmul.f32 %v2616_v59, %v3829_v5  ;;  %v551_v53 = vadd.f32 %v2600_v47, %v513_v44  ;;  %v584_v37 = vld [vmem:[#allocation2 + $0xb0] sm:$0xff] }
  0xb4   : > { %v1509_v38 = vmul.f32 0.7978846, %v1477_v7  ;;  %v1674_v2 = vmul.f32 %v2844_v31, %v1635_v62  ;;  %v1446_v23 = vmul.f32 0.044715, %v1414_v0  ;;  %v950_v15 = vadd.f32 %v918_v29, %v850_v43  ;;  %v3830_v29 = vld [vmem:[#allocation20_spill] sm:$0xff]  ;;  %v2966_v7 = vld [vmem:[#allocation2 + $0xd0] sm:$0xff] }
  0xb5   : > { %1776 = vst [vmem:[%s2882_s14 + $0x20] sm:$0xff] %v1744_v19  ;;  %v1319_v63 = vmul.f32 %v2597_v46, %v2929_v14  ;;  %v651_v61 = vadd.f32 %v619_v28, %v551_v53  ;;  %v719_v34 = vmul.f32 %v2778_v3, %v2606_v51  ;;  %v819_v60 = vmul.f32 %v2862_v54, %v2608_v52 }
  0xb6   : > { %2084 = vtanh.f32 %v1509_v38  ;;  %v1713_v24 = vadd.f32 %v2854_v33, %v1674_v2  ;;  %v1478_v32 = vadd.f32 %v1446_v23, %v2907_v26  ;;  %v1050_v16 = vadd.f32 %v1018_v45, %v950_v15  ;;  %v2972_v38 = vld [vmem:[#allocation2 + $0xef] sm:$0xff] }
  0xb7   : > { %v2083_v4 = vpop.eup %2082  ;;  %v919_v25 = vmul.f32 %v2610_v55, %v3828_v36  ;;  %v751_v27 = vadd.f32 %v719_v34, %v651_v61  ;;  %v1019_v39 = vmul.f32 %v2874_v56, %v2612_v57  ;;  %v1120_v3 = vmul.f32 %v2614_v58, %v2946_v17  ;;  %v2981_v23 = vld [vmem:[#allocation2 + $0xf0] sm:$0xff]  ;;  %v585_v15 = vld [vmem:[#allocation2 + $0xc8] sm:$0xff] }
  0xb8   : > { %v1745_v6 = vadd.f32 %v1713_v24, %v2517_v9  ;;  %v1572_v42 = vadd.f32 1.0, %v2083_v4  ;;  %v1510_v18 = vmul.f32 0.7978846, %v1478_v32  ;;  %v1151_v35 = vadd.f32 %v1119_v8, %v1050_v16  ;;  %v2992_v24 = vld [vmem:[#allocation2 + $0xf1] sm:$0xff] }
  0xb9   : > { %v514_v40 = vmul.f32 %v2802_v49, %v2602_v48  ;;  %v1220_v20 = vmul.f32 %v2616_v59, %v3830_v29  ;;  %v851_v62 = vadd.f32 %v819_v60, %v751_v27  ;;  %v1320_v0 = vmul.f32 %v2597_v46, %v2955_v22 }
  0xba   : > { %1777 = vst [vmem:[%s2882_s14 + $0x28] sm:$0xff] %v1745_v6  ;;  %v1604_v36 = vmul.f32 0.5, %v1572_v42  ;;  %2086 = vtanh.f32 %v1510_v18  ;;  %v1251_v9 = vadd.f32 %v1219_v13, %v1151_v35  ;;  %v620_v19 = vmul.f32 %v2604_v50, %v584_v37  ;;  %v3002_v18 = vld [vmem:[#allocation2 + $0xe8] sm:$0xff] }
  0xbb   : > { %v552_v43 = vadd.f32 %v2600_v47, %v514_v40  ;;  %v720_v44 = vmul.f32 %v2809_v21, %v2606_v51  ;;  %v820_v2 = vmul.f32 %v2924_v41, %v2608_v52  ;;  %v951_v28 = vadd.f32 %v919_v25, %v851_v62 }
  0xbc   : > { %v1636_v49 = vmul.f32 %v1604_v36, %v2851_v1  ;;  %v2975_v45 = vadd.f32 %v1319_v63, %v1251_v9  ;;  %v920_v5 = vmul.f32 %v2610_v55, %v2966_v7  ;;  %v1020_v13 = vmul.f32 %v2929_v14, %v2612_v57 }
  0xbd   : > { %v652_v8 = vadd.f32 %v620_v19, %v552_v43  ;;  %v1121_v21 = vmul.f32 %v2614_v58, %v2972_v38  ;;  %v515_v32 = vmul.f32 %v2862_v54, %v2602_v48  ;;  %v1051_v63 = vadd.f32 %v1019_v39, %v951_v28 }
  0xbe   : > { %v1675_v1 = vmul.f32 %v2844_v31, %v1636_v49  ;;  %v1383_v53 = vmul.f32 %v2975_v45, %v2975_v45  ;;  %v1221_v61 = vmul.f32 %v2616_v59, %v2981_v23  ;;  %v621_v34 = vmul.f32 %v2604_v50, %v585_v15 }
  0xbf   : > { %v752_v4 = vadd.f32 %v720_v44, %v652_v8  ;;  %v553_v42 = vadd.f32 %v2600_v47, %v515_v32  ;;  %v1152_v35 = vadd.f32 %v1120_v3, %v1051_v63  ;;  %v1321_v37 = vmul.f32 %v2597_v46, %v2992_v24  ;;  %v3027_v63 = vld [vmem:[#allocation2 + $0x107] sm:$0xff] }
  0xc0   : > { %v2085_v16 = vpop.eup %2084  ;;  %v1714_v60 = vadd.f32 %v2854_v33, %v1675_v1  ;;  %v1415_v6 = vmul.f32 %v1383_v53, %v2975_v45  ;;  %v721_v27 = vmul.f32 %v2874_v56, %v2606_v51  ;;  %v821_v43 = vmul.f32 %v2946_v17, %v2608_v52 }
  0xc1   : > { %v1573_v25 = vadd.f32 1.0, %v2085_v16  ;;  %v852_v54 = vadd.f32 %v820_v2, %v752_v4  ;;  %v653_v9 = vadd.f32 %v621_v34, %v553_v42  ;;  %v1252_v29 = vadd.f32 %v1220_v20, %v1152_v35 }
  0xc2   : > { %v1746_v39 = vadd.f32 %v1714_v60, %v2523_v10  ;;  %v1447_v36 = vmul.f32 0.044715, %v1415_v6  ;;  %v921_v3 = vmul.f32 %v2610_v55, %v3002_v18  ;;  %v1021_v10 = vmul.f32 %v2955_v22, %v2612_v57  ;;  %v3035_v6 = vld [vmem:[#allocation2 + $0x108] sm:$0xff] }
  0xc3   : > { %v1605_v40 = vmul.f32 0.5, %v1573_v25  ;;  %v952_v62 = vadd.f32 %v920_v5, %v852_v54  ;;  %v753_v56 = vadd.f32 %v721_v27, %v653_v9  ;;  %v3018_v15 = vadd.f32 %v1320_v0, %v1252_v29 }
  0xc4   : > { %v2087_v19 = vpop.eup %2086  ;;  %1778 = vst [vmem:[%s2882_s14 + $0x30] sm:$0xff] %v1746_v39  ;;  %v1479_v44 = vadd.f32 %v1447_v36, %v2975_v45  ;;  %v516_v28 = vmul.f32 %v2924_v41, %v2602_v48  ;;  %v722_v4 = vmul.f32 %v2929_v14, %v2606_v51  ;;  %v1122_v27 = vmul.f32 %v2614_v58, %v3027_v63  ;;  %v3047_v36 = vld [vmem:[#allocation2 + $0x10f] sm:$0xff] }
  0xc5   : > { %v1637_v49 = vmul.f32 %v1605_v40, %v2888_v30  ;;  %v1574_v2 = vadd.f32 1.0, %v2087_v19  ;;  %v1052_v20 = vadd.f32 %v1020_v13, %v952_v62  ;;  %v853_v1 = vadd.f32 %v821_v43, %v753_v56 }
  0xc6   : > { %v1511_v5 = vmul.f32 0.7978846, %v1479_v44  ;;  %v622_v30 = vmul.f32 %v2966_v7, %v2604_v50  ;;  %v1384_v32 = vmul.f32 %v3018_v15, %v3018_v15  ;;  %v554_v0 = vadd.f32 %v2600_v47, %v516_v28 }
  0xc7   : > { %v1676_v8 = vmul.f32 %v2844_v31, %v1637_v49  ;;  %v1606_v53 = vmul.f32 0.5, %v1574_v2  ;;  %v1153_v16 = vadd.f32 %v1121_v21, %v1052_v20  ;;  %v953_v41 = vadd.f32 %v921_v3, %v853_v1  ;;  %v3037_v21 = vld [vmem:[#allocation2 + $0x109] sm:$0xff]  ;;  %v3066_v2 = vld [vmem:[#allocation2 + $0x111] sm:$0xff] }
  0xc8   : > { %2088 = vtanh.f32 %v1511_v5  ;;  %v1416_v60 = vmul.f32 %v1384_v32, %v3018_v15  ;;  %v654_v42 = vadd.f32 %v622_v30, %v554_v0  ;;  %v822_v14 = vmul.f32 %v2972_v38, %v2608_v52  ;;  %v3060_v49 = vld [vmem:[#allocation2 + $0x110] sm:$0xff] }
  0xc9   : > { %v1715_v13 = vadd.f32 %v2854_v33, %v1676_v8  ;;  %v1638_v34 = vmul.f32 %v1606_v53, %v2907_v26  ;;  %v1253_v25 = vadd.f32 %v1221_v61, %v1153_v16  ;;  %v1053_v54 = vadd.f32 %v1021_v10, %v953_v41 }
  0xca   : > { %v1448_v26 = vmul.f32 0.044715, %v1416_v60  ;;  %v754_v61 = vadd.f32 %v722_v4, %v654_v42  ;;  %v1322_v29 = vmul.f32 %v2597_v46, %v3037_v21  ;;  %v922_v62 = vmul.f32 %v2981_v23, %v2610_v55 }
  0xcb   : > { %v1747_v35 = vadd.f32 %v1715_v13, %v2526_v11  ;;  %v1677_v39 = vmul.f32 %v2844_v31, %v1638_v34  ;;  %v3045_v40 = vadd.f32 %v1321_v37, %v1253_v25  ;;  %v1154_v9 = vadd.f32 %v1122_v27, %v1053_v54  ;;  %v3088_v25 = vld [vmem:[#allocation2 + $0x127] sm:$0xff] }
  0xcc   : > { %v1222_v11 = vmul.f32 %v2616_v59, %v3035_v6  ;;  %v1480_v3 = vadd.f32 %v1448_v26, %v3018_v15  ;;  %v854_v19 = vadd.f32 %v822_v14, %v754_v61  ;;  %v1022_v56 = vmul.f32 %v2992_v24, %v2612_v57  ;;  %v3096_v61 = vld [vmem:[#allocation2 + $0x128] sm:$0xff] }
  0xcd   : > { %1779 = vst [vmem:[%s2882_s14 + $0x38] sm:$0xff] %v1747_v35  ;;  %v1716_v43 = vadd.f32 %v2854_v33, %v1677_v39  ;;  %v1385_v37 = vmul.f32 %v3045_v40, %v3045_v40  ;;  %v1123_v10 = vmul.f32 %v2614_v58, %v3047_v36  ;;  %v517_v20 = vmul.f32 %v2946_v17, %v2602_v48 }
  0xce   : > { %v1254_v44 = vadd.f32 %v1222_v11, %v1154_v9  ;;  %v1512_v8 = vmul.f32 0.7978846, %v1480_v3  ;;  %v954_v1 = vadd.f32 %v922_v62, %v854_v19  ;;  %v1223_v53 = vmul.f32 %v2616_v59, %v3060_v49 }
  0xcf   : > { %v1748_v28 = vadd.f32 %v1716_v43, %v2529_v12  ;;  %v1417_v5 = vmul.f32 %v1385_v37, %v3045_v40  ;;  %v555_v32 = vadd.f32 %v2600_v47, %v517_v20  ;;  %v623_v16 = vmul.f32 %v3002_v18, %v2604_v50  ;;  %v3102_v37 = vld [vmem:[#allocation2 + $0x129] sm:$0xff] }
  0xd0   : > { %v3072_v30 = vadd.f32 %v1322_v29, %v1254_v44  ;;  %2090 = vtanh.f32 %v1512_v8  ;;  %v1054_v17 = vadd.f32 %v1022_v56, %v954_v1  ;;  %v1323_v12 = vmul.f32 %v2597_v46, %v3066_v2 }
  0xd1   : > { %1780 = vst [vmem:[%s2882_s14 + $0x40] sm:$0xff] %v1748_v28  ;;  %v1449_v0 = vmul.f32 0.044715, %v1417_v5  ;;  %v655_v4 = vadd.f32 %v623_v16, %v555_v32  ;;  %v723_v34 = vmul.f32 %v2955_v22, %v2606_v51  ;;  %v823_v60 = vmul.f32 %v3027_v63, %v2608_v52 }
  0xd2   : > { %v2089_v13 = vpop.eup %2088  ;;  %v1386_v41 = vmul.f32 %v3072_v30, %v3072_v30  ;;  %v1155_v54 = vadd.f32 %v1123_v10, %v1054_v17  ;;  %v923_v27 = vmul.f32 %v3035_v6, %v2610_v55  ;;  %v1023_v26 = vmul.f32 %v3037_v21, %v2612_v57 }
  0xd3   : > { %v1575_v42 = vadd.f32 1.0, %v2089_v13  ;;  %v1481_v35 = vadd.f32 %v1449_v0, %v3045_v40  ;;  %v755_v39 = vadd.f32 %v723_v34, %v655_v4  ;;  %v518_v22 = vmul.f32 %v2972_v38, %v2602_v48  ;;  %v3128_v34 = vld [vmem:[#allocation2 + $0x12f] sm:$0xff] }
  0xd4   : > { %v1418_v14 = vmul.f32 %v1386_v41, %v3072_v30  ;;  %v1255_v29 = vadd.f32 %v1223_v53, %v1155_v54  ;;  %v1124_v62 = vmul.f32 %v2614_v58, %v3088_v25  ;;  %v624_v44 = vmul.f32 %v2981_v23, %v2604_v50  ;;  %v3132_v54 = vld [vmem:[#allocation2 + $0x130] sm:$0xff] }
  0xd5   : > { %v1607_v9 = vmul.f32 0.5, %v1575_v42  ;;  %v1513_v11 = vmul.f32 0.7978846, %v1481_v35  ;;  %v855_v3 = vadd.f32 %v823_v60, %v755_v39  ;;  %v556_v19 = vadd.f32 %v2600_v47, %v518_v22 }
  0xd6   : > { %v1450_v43 = vmul.f32 0.044715, %v1418_v14  ;;  %v3108_v10 = vadd.f32 %v1323_v12, %v1255_v29  ;;  %v1224_v38 = vmul.f32 %v2616_v59, %v3096_v61  ;;  %v724_v5 = vmul.f32 %v2992_v24, %v2606_v51 }
  0xd7   : > { %v1639_v56 = vmul.f32 %v1607_v9, %v2975_v45  ;;  %2092 = vtanh.f32 %v1513_v11  ;;  %v955_v28 = vadd.f32 %v923_v27, %v855_v3  ;;  %v656_v8 = vadd.f32 %v624_v44, %v556_v19  ;;  %v2134_v27 = vld [vmem:[#allocation2 + $0xb0] sm:$0xff] }
  0xd8   : > { %v1482_v20 = vadd.f32 %v1450_v43, %v3072_v30  ;;  %v1387_v53 = vmul.f32 %v3108_v10, %v3108_v10  ;;  %v1324_v45 = vmul.f32 %v2597_v46, %v3102_v37  ;;  %v824_v32 = vmul.f32 %v3047_v36, %v2608_v52 }
  0xd9   : > { %v1678_v1 = vmul.f32 %v2844_v31, %v1639_v56  ;;  %v1055_v0 = vadd.f32 %v1023_v26, %v955_v28  ;;  %v756_v17 = vadd.f32 %v724_v5, %v656_v8  ;;  %v924_v12 = vmul.f32 %v3060_v49, %v2610_v55  ;;  %v3134_v26 = vld [vmem:[#allocation2 + $0x131] sm:$0xff] }
  0xda   : > { %v1514_v16 = vmul.f32 0.7978846, %v1482_v20  ;;  %v2091_v13 = vpop.eup %2090  ;;  %v1419_v41 = vmul.f32 %v1387_v53, %v3108_v10  ;;  %v1024_v4 = vmul.f32 %v3066_v2, %v2612_v57  ;;  %v519_v46 = vmul.f32 %v3027_v63, %v2602_v48 }
  0xdb   : > { %v1717_v24 = vadd.f32 %v2854_v33, %v1678_v1  ;;  %v1576_v60 = vadd.f32 1.0, %v2091_v13  ;;  %v1156_v42 = vadd.f32 %v1124_v62, %v1055_v0  ;;  %v856_v35 = vadd.f32 %v824_v32, %v756_v17  ;;  %v3162_v0 = vld [vmem:[#allocation2 + $0x147] sm:$0xff] }
  0xdc   : > { %2094 = vtanh.f32 %v1514_v16  ;;  %v1451_v39 = vmul.f32 0.044715, %v1419_v41  ;;  %v557_v22 = vadd.f32 %v2600_v47, %v519_v46  ;;  %v625_v9 = vmul.f32 %v3035_v6, %v2604_v50 }
  0xdd   : > { %v1749_v14 = vadd.f32 %v2134_v27, %v1717_v24  ;;  %v1608_v11 = vmul.f32 0.5, %v1576_v60  ;;  %v1256_v63 = vadd.f32 %v1224_v38, %v1156_v42  ;;  %v956_v29 = vadd.f32 %v924_v12, %v856_v35  ;;  %v3151_v38 = vld [vmem:[%s2593_s10 + $0x8] ss:$0 sm:$0xff]  ;;  %v3175_v27 = vld [vmem:[%s2582_s6] ss:$0 sm:$0xff]  ;;  %s2291_s6 = smov [#allocation7]  }
  0xde   : > { %v1125_v62 = vmul.f32 %v2614_v58, %v3128_v34  ;;  %v1483_v43 = vadd.f32 %v1451_v39, %v3108_v10  ;;  %v1225_v3 = vmul.f32 %v2616_v59, %v3132_v54  ;;  %v657_v19 = vadd.f32 %v625_v9, %v557_v22  ;;  %v3172_v35 = vld [vmem:[#allocation2 + $0x148] sm:$0xff] }
  0xdf   : > { %1781 = vst [vmem:[%s2882_s14 + $0x48] sm:$0xff] %v1749_v14  ;;  %v725_v44 = vmul.f32 %v3037_v21, %v2606_v51  ;;  %v1640_v47 = vmul.f32 %v1608_v11, %v3018_v15  ;;  %v3148_v56 = vadd.f32 %v1324_v45, %v1256_v63  ;;  %v1056_v20 = vadd.f32 %v1024_v4, %v956_v29  ;;  %v2137_v22 = vld [vmem:[#allocation2 + $0xc8] sm:$0xff] }
  0xe0   : > { %v1325_v28 = vmul.f32 %v3151_v38, %v3134_v26  ;;  %v1515_v5 = vmul.f32 0.7978846, %v1483_v43  ;;  %v825_v53 = vmul.f32 %v3088_v25, %v2608_v52  ;;  %v925_v32 = vmul.f32 %v3096_v61, %v2610_v55 }
  0xe1   : > { %v2093_v8 = vpop.eup %2092  ;;  %v757_v1 = vadd.f32 %v725_v44, %v657_v19  ;;  %v1679_v21 = vmul.f32 %v2844_v31, %v1640_v47  ;;  %v1388_v45 = vmul.f32 %v3148_v56, %v3148_v56  ;;  %v1157_v16 = vadd.f32 %v1125_v62, %v1056_v20 }
  0xe2   : > { %v1577_v15 = vadd.f32 1.0, %v2093_v8  ;;  %2096 = vtanh.f32 %v1515_v5  ;;  %v1025_v12 = vmul.f32 %v3102_v37, %v2612_v57  ;;  %v520_v13 = vmul.f32 %v3047_v36, %v2602_v48 }
  0xe3   : > { %v857_v17 = vadd.f32 %v825_v53, %v757_v1  ;;  %v1718_v24 = vadd.f32 %v2854_v33, %v1679_v21  ;;  %v1420_v4 = vmul.f32 %v1388_v45, %v3148_v56  ;;  %v1257_v46 = vadd.f32 %v1225_v3, %v1157_v16  ;;  %v3183_v3 = vld [vmem:[#allocation2 + $0x149] sm:$0xff] }
  0xe4   : > { %v1609_v41 = vmul.f32 0.5, %v1577_v15  ;;  %v1126_v42 = vmul.f32 %v2614_v58, %v3162_v0  ;;  %v558_v14 = vadd.f32 %v3175_v27, %v520_v13  ;;  %v626_v36 = vmul.f32 %v3060_v49, %v2604_v50  ;;  %v3203_v13 = vld [vmem:[#allocation2 + $0x14f] sm:$0xff] }
  0xe5   : > { %v957_v60 = vadd.f32 %v925_v32, %v857_v17  ;;  %v1750_v9 = vadd.f32 %v2137_v22, %v1718_v24  ;;  %v1452_v63 = vmul.f32 0.044715, %v1420_v4  ;;  %v3181_v29 = vadd.f32 %v1325_v28, %v1257_v46 }
  0xe6   : > { %v2095_v39 = vpop.eup %2094  ;;  %v1641_v11 = vmul.f32 %v1609_v41, %v3045_v40  ;;  %v658_v19 = vadd.f32 %v626_v36, %v558_v14  ;;  %v726_v44 = vmul.f32 %v3066_v2, %v2606_v51  ;;  %v1226_v40 = vmul.f32 %v2616_v59, %v3172_v35  ;;  %v3211_v14 = vld [vmem:[#allocation2 + $0x150] sm:$0xff] }
  0xe7   : > { %v1578_v62 = vadd.f32 1.0, %v2095_v39  ;;  %v1057_v43 = vadd.f32 %v1025_v12, %v957_v60  ;;  %1782 = vst [vmem:[%s2882_s14 + $0x50] sm:$0xff] %v1750_v9  ;;  %v1484_v20 = vadd.f32 %v1452_v63, %v3148_v56  ;;  %v1389_v8 = vmul.f32 %v3181_v29, %v3181_v29 }
  0xe8   : > { %v1680_v47 = vmul.f32 %v2844_v31, %v1641_v11  ;;  %v758_v1 = vadd.f32 %v726_v44, %v658_v19  ;;  %v826_v53 = vmul.f32 %v3128_v34, %v2608_v52  ;;  %v1326_v15 = vmul.f32 %v3151_v38, %v3183_v3 }
  0xe9   : > { %v1610_v28 = vmul.f32 0.5, %v1578_v62  ;;  %v1158_v5 = vadd.f32 %v1126_v42, %v1057_v43  ;;  %v1516_v2 = vmul.f32 0.7978846, %v1484_v20  ;;  %v1421_v21 = vmul.f32 %v1389_v8, %v3181_v29  ;;  %v3224_v43 = vld [vmem:[#allocation2 + $0x151] sm:$0xff] }
  0xea   : > { %v1719_v32 = vadd.f32 %v2854_v33, %v1680_v47  ;;  %v858_v17 = vadd.f32 %v826_v53, %v758_v1  ;;  %v926_v12 = vmul.f32 %v3132_v54, %v2610_v55  ;;  %v1026_v4 = vmul.f32 %v3134_v26, %v2612_v57 }
  0xeb   : > { %v1642_v45 = vmul.f32 %v1610_v28, %v3072_v30  ;;  %v1258_v16 = vadd.f32 %v1226_v40, %v1158_v5  ;;  %2098 = vtanh.f32 %v1516_v2  ;;  %v1453_v41 = vmul.f32 0.044715, %v1421_v21 }
  0xec   : > { %v1751_v24 = vadd.f32 %v1719_v32, %v2966_v7  ;;  %v2097_v46 = vpop.eup %2096  ;;  %v958_v30 = vadd.f32 %v926_v12, %v858_v17  ;;  %v521_v36 = vmul.f32 %v3088_v25, %v2602_v48  ;;  %v1127_v22 = vmul.f32 %v2614_v58, %v3203_v13  ;;  %v3236_v32 = vld [vmem:[#allocation2 + $0x167] sm:$0xff] }
  0xed   : > { %v1681_v60 = vmul.f32 %v2844_v31, %v1642_v45  ;;  %v3209_v42 = vadd.f32 %v1326_v15, %v1258_v16  ;;  %v1579_v39 = vadd.f32 1.0, %v2097_v46  ;;  %v1485_v7 = vadd.f32 %v1453_v41, %v3181_v29  ;;  %v3255_v46 = vld [vmem:[#allocation2 + $0x169] sm:$0xff] }
  0xee   : > { %1783 = vst [vmem:[%s2882_s14 + $0x58] sm:$0xff] %v1751_v24  ;;  %v627_v9 = vmul.f32 %v3096_v61, %v2604_v50  ;;  %v1058_v62 = vadd.f32 %v1026_v4, %v958_v30  ;;  %v559_v25 = vadd.f32 %v3175_v27, %v521_v36  ;;  %v1227_v47 = vmul.f32 %v2616_v59, %v3211_v14 }
  0xef   : > { %v1720_v11 = vadd.f32 %v2854_v33, %v1681_v60  ;;  %v1390_v63 = vmul.f32 %v3209_v42, %v3209_v42  ;;  %v1611_v19 = vmul.f32 0.5, %v1579_v39  ;;  %v1517_v44 = vmul.f32 0.7978846, %v1485_v7 }
  0xf0   : > { %v727_v20 = vmul.f32 %v3102_v37, %v2606_v51  ;;  %v1159_v28 = vadd.f32 %v1127_v22, %v1058_v62  ;;  %v659_v5 = vadd.f32 %v627_v9, %v559_v25  ;;  %v1327_v53 = vmul.f32 %v3151_v38, %v3224_v43 }
  0xf1   : > { %v1752_v8 = vadd.f32 %v1720_v11, %v3002_v18  ;;  %v1422_v40 = vmul.f32 %v1390_v63, %v3209_v42  ;;  %v1643_v1 = vmul.f32 %v1611_v19, %v3108_v10  ;;  %2100 = vtanh.f32 %v1517_v44  ;;  %v3241_v18 = vld [vmem:[#allocation2 + $0x168] sm:$0xff] }
  0xf2   : > { %v1259_v21 = vadd.f32 %v1227_v47, %v1159_v28  ;;  %v759_v15 = vadd.f32 %v727_v20, %v659_v5  ;;  %v827_v37 = vmul.f32 %v3162_v0, %v2608_v52  ;;  %v927_v10 = vmul.f32 %v3172_v35, %v2610_v55 }
  0xf3   : > { %1784 = vst [vmem:[%s2882_s14 + $0x60] sm:$0xff] %v1752_v8  ;;  %v1454_v2 = vmul.f32 0.044715, %v1422_v40  ;;  %v1682_v45 = vmul.f32 %v2844_v31, %v1643_v1  ;;  %v1027_v16 = vmul.f32 %v3183_v3, %v2612_v57  ;;  %v522_v17 = vmul.f32 %v3128_v34, %v2602_v48  ;;  %v3271_v8 = vld [vmem:[#allocation2 + $0x16f] sm:$0xff] }
  0xf4   : > { %v3251_v24 = vadd.f32 %v1327_v53, %v1259_v21  ;;  %v859_v41 = vadd.f32 %v827_v37, %v759_v15  ;;  %v1128_v4 = vmul.f32 %v2614_v58, %v3236_v32  ;;  %v1228_v36 = vmul.f32 %v2616_v59, %v3241_v18  ;;  %v3283_v21 = vld [vmem:[#allocation2 + $0x170] sm:$0xff] }
  0xf5   : > { %v1486_v12 = vadd.f32 %v1454_v2, %v3209_v42  ;;  %v2099_v60 = vpop.eup %2098  ;;  %v1721_v30 = vadd.f32 %v2854_v33, %v1682_v45  ;;  %v560_v39 = vadd.f32 %v3175_v27, %v522_v17  ;;  %v628_v34 = vmul.f32 %v3132_v54, %v2604_v50 }
  0xf6   : > { %v1580_v7 = vadd.f32 1.0, %v2099_v60  ;;  %v1391_v9 = vmul.f32 %v3251_v24, %v3251_v24  ;;  %v959_v11 = vadd.f32 %v927_v10, %v859_v41  ;;  %v1328_v62 = vmul.f32 %v3151_v38, %v3255_v46  ;;  %v3292_v41 = vld [vmem:[#allocation2 + $0x171] sm:$0xff] }
  0xf7   : > { %v1518_v22 = vmul.f32 0.7978846, %v1486_v12  ;;  %v1753_v63 = vadd.f32 %v1721_v30, %v2981_v23  ;;  %v660_v25 = vadd.f32 %v628_v34, %v560_v39  ;;  %v728_v19 = vmul.f32 %v3134_v26, %v2606_v51 }
  0xf8   : > { %v1612_v44 = vmul.f32 0.5, %v1580_v7  ;;  %v1423_v47 = vmul.f32 %v1391_v9, %v3251_v24  ;;  %v1059_v20 = vadd.f32 %v1027_v16, %v959_v11  ;;  %v828_v28 = vmul.f32 %v3203_v13, %v2608_v52 }
  0xf9   : > { %2102 = vtanh.f32 %v1518_v22  ;;  %1785 = vst [vmem:[%s2882_s14 + $0x68] sm:$0xff] %v1753_v63  ;;  %v760_v40 = vadd.f32 %v728_v19, %v660_v25  ;;  %v928_v23 = vmul.f32 %v3211_v14, %v2610_v55  ;;  %v523_v5 = vmul.f32 %v3162_v0, %v2602_v48 }
  0xfa   : > { %v1644_v26 = vmul.f32 %v1612_v44, %v3148_v56  ;;  %v1455_v1 = vmul.f32 0.044715, %v1423_v47  ;;  %v1160_v53 = vadd.f32 %v1128_v4, %v1059_v20  ;;  %v1028_v2 = vmul.f32 %v3224_v43, %v2612_v57 }
  0xfb   : > { %v2101_v15 = vpop.eup %2100  ;;  %v860_v37 = vadd.f32 %v828_v28, %v760_v40  ;;  %v1129_v45 = vmul.f32 %v2614_v58, %v3271_v8  ;;  %v561_v10 = vadd.f32 %v3175_v27, %v523_v5  ;;  %v629_v16 = vmul.f32 %v3172_v35, %v2604_v50  ;;  %v3311_v40 = vld [vmem:[#allocation2 + $0x187] sm:$0xff] }
  0xfc   : > { %v1683_v0 = vmul.f32 %v2844_v31, %v1644_v26  ;;  %v1581_v56 = vadd.f32 1.0, %v2101_v15  ;;  %v1487_v17 = vadd.f32 %v1455_v1, %v3251_v24  ;;  %v1260_v12 = vadd.f32 %v1228_v36, %v1160_v53  ;;  %v3322_v15 = vld [vmem:[#allocation2 + $0x188] sm:$0xff] }
  0xfd   : > { %v960_v4 = vadd.f32 %v928_v23, %v860_v37  ;;  %v1229_v60 = vmul.f32 %v2616_v59, %v3283_v21  ;;  %v661_v30 = vadd.f32 %v629_v16, %v561_v10  ;;  %v729_v39 = vmul.f32 %v3183_v3, %v2606_v51 }
  0xfe   : > { %v1722_v34 = vadd.f32 %v2854_v33, %v1683_v0  ;;  %v1613_v7 = vmul.f32 0.5, %v1581_v56  ;;  %v1519_v22 = vmul.f32 0.7978846, %v1487_v17  ;;  %v3299_v9 = vadd.f32 %v1328_v62, %v1260_v12  ;;  %v3332_v12 = vld [vmem:[#allocation2 + $0x189] sm:$0xff] }
  0xff   : > { %v1060_v11 = vadd.f32 %v1028_v2, %v960_v4  ;;  %v1329_v36 = vmul.f32 %v3151_v38, %v3292_v41  ;;  %v761_v63 = vadd.f32 %v729_v39, %v661_v30  ;;  %v829_v25 = vmul.f32 %v3236_v32, %v2608_v52 }
 0x100   : > { %v1754_v19 = vadd.f32 %v1722_v34, %v3035_v6  ;;  %v1645_v44 = vmul.f32 %v1613_v7, %v3181_v29  ;;  %2104 = vtanh.f32 %v1519_v22  ;;  %v1392_v3 = vmul.f32 %v3299_v9, %v3299_v9 }
 0x101   : > { %v1161_v47 = vadd.f32 %v1129_v45, %v1060_v11  ;;  %v861_v20 = vadd.f32 %v829_v25, %v761_v63  ;;  %v929_v62 = vmul.f32 %v3241_v18, %v2610_v55  ;;  %v524_v28 = vmul.f32 %v3203_v13, %v2602_v48 }
 0x102   : > { %1786 = vst [vmem:[%s2882_s14 + $0x70] sm:$0xff] %v1754_v19  ;;  %v1684_v6 = vmul.f32 %v2844_v31, %v1645_v44  ;;  %v1424_v29 = vmul.f32 %v1392_v3, %v3299_v9  ;;  %v1029_v5 = vmul.f32 %v3255_v46, %v2612_v57  ;;  %v630_v26 = vmul.f32 %v3211_v14, %v2604_v50 }
 0x103   : > { %v2103_v23 = vpop.eup %2102  ;;  %v1261_v53 = vadd.f32 %v1229_v60, %v1161_v47  ;;  %v961_v2 = vadd.f32 %v929_v62, %v861_v20  ;;  %v562_v37 = vadd.f32 %v3175_v27, %v524_v28  ;;  %v1130_v10 = vmul.f32 %v2614_v58, %v3311_v40  ;;  %v3352_v47 = vld [vmem:[#allocation2 + $0x18f] sm:$0xff] }
 0x104   : > { %v1582_v1 = vadd.f32 1.0, %v2103_v23  ;;  %v1723_v13 = vadd.f32 %v2854_v33, %v1684_v6  ;;  %v1456_v45 = vmul.f32 0.044715, %v1424_v29  ;;  %v730_v16 = vmul.f32 %v3224_v43, %v2606_v51 }
 0x105   : > { %v3330_v56 = vadd.f32 %v1329_v36, %v1261_v53  ;;  %v1061_v17 = vadd.f32 %v1029_v5, %v961_v2  ;;  %v662_v4 = vadd.f32 %v630_v26, %v562_v37  ;;  %v1230_v39 = vmul.f32 %v2616_v59, %v3322_v15  ;;  %v3362_v5 = vld [vmem:[#allocation2 + $0x190] sm:$0xff] }
 0x106   : > { %v1614_v0 = vmul.f32 0.5, %v1582_v1  ;;  %v1755_v60 = vadd.f32 %v1723_v13, %v3060_v49  ;;  %v1488_v30 = vadd.f32 %v1456_v45, %v3299_v9  ;;  %v830_v34 = vmul.f32 %v3271_v8, %v2608_v52  ;;  %v3366_v53 = vld [vmem:[#allocation2 + $0x191] sm:$0xff] }
 0x107   : > { %v1393_v43 = vmul.f32 %v3330_v56, %v3330_v56  ;;  %v1162_v22 = vadd.f32 %v1130_v10, %v1061_v17  ;;  %v762_v11 = vadd.f32 %v730_v16, %v662_v4  ;;  %v1330_v49 = vmul.f32 %v3151_v38, %v3332_v12 }
 0x108   : > { %v1646_v7 = vmul.f32 %v1614_v0, %v3209_v42  ;;  %1787 = vst [vmem:[%s2882_s14 + $0x78] sm:$0xff] %v1755_v60  ;;  %v1520_v36 = vmul.f32 0.7978846, %v1488_v30  ;;  %v930_v63 = vmul.f32 %v3283_v21, %v2610_v55  ;;  %v525_v25 = vmul.f32 %v3236_v32, %v2602_v48 }
 0x109   : > { %v1425_v42 = vmul.f32 %v1393_v43, %v3330_v56  ;;  %v1262_v44 = vadd.f32 %v1230_v39, %v1162_v22  ;;  %v862_v3 = vadd.f32 %v830_v34, %v762_v11  ;;  %v1030_v62 = vmul.f32 %v3292_v41, %v2612_v57  ;;  %v3385_v43 = vld [vmem:[#allocation2 + $0x1a7] sm:$0xff] }
 0x10a   : > { %v1685_v19 = vmul.f32 %v2844_v31, %v1646_v7  ;;  %v2105_v20 = vpop.eup %2104  ;;  %2106 = vtanh.f32 %v1520_v36  ;;  %v563_v28 = vadd.f32 %v3175_v27, %v525_v25  ;;  %v631_v23 = vmul.f32 %v3241_v18, %v2604_v50  ;;  %v3387_v22 = vld [vmem:[#allocation2 + $0x1a8] sm:$0xff] }
 0x10b   : > { %v1583_v6 = vadd.f32 1.0, %v2105_v20  ;;  %v1457_v31 = vmul.f32 0.044715, %v1425_v42  ;;  %v3360_v29 = vadd.f32 %v1330_v49, %v1262_v44  ;;  %v962_v26 = vadd.f32 %v930_v63, %v862_v3  ;;  %v3397_v42 = vld [vmem:[#allocation2 + $0x1a9] sm:$0xff]  ;;  %v3403_v20 = vld [vmem:[%s2840_s8] ss:$0 sm:$0xff] }
 0x10c   : > { %v1724_v32 = vadd.f32 %v2854_v33, %v1685_v19  ;;  %v1131_v1 = vmul.f32 %v2614_v58, %v3352_v47  ;;  %v663_v2 = vadd.f32 %v631_v23, %v563_v28  ;;  %v731_v37 = vmul.f32 %v3255_v46, %v2606_v51 }
 0x10d   : > { %v1615_v33 = vmul.f32 0.5, %v1583_v6  ;;  %v1489_v45 = vadd.f32 %v1457_v31, %v3330_v56  ;;  %v1394_v10 = vmul.f32 %v3360_v29, %v3360_v29  ;;  %v1062_v16 = vadd.f32 %v1030_v62, %v962_v26 }
 0x10e   : > { %v1756_v13 = vadd.f32 %v1724_v32, %v3096_v61  ;;  %v1231_v0 = vmul.f32 %v2616_v59, %v3362_v5  ;;  %v763_v17 = vadd.f32 %v731_v37, %v663_v2  ;;  %v831_v4 = vmul.f32 %v3311_v40, %v2608_v52 }
 0x10f   : > { %v1647_v46 = vmul.f32 %v1615_v33, %v3251_v24  ;;  %v1521_v60 = vmul.f32 0.7978846, %v1489_v45  ;;  %v1426_v61 = vmul.f32 %v1394_v10, %v3360_v29  ;;  %v1331_v30 = vmul.f32 %v3151_v38, %v3366_v53  ;;  %v3392_v24 = vld [vmem:[%s2831_s7] ss:$0 sm:$0xff] }
 0x110   : > { %1788 = vst [vmem:[%s2882_s14 + $0x80] sm:$0xff] %v1756_v13  ;;  %v1163_v39 = vadd.f32 %v1131_v1, %v1062_v16  ;;  %v863_v34 = vadd.f32 %v831_v4, %v763_v17  ;;  %v931_v7 = vmul.f32 %v3322_v15, %v2610_v55  ;;  %v526_v11 = vmul.f32 %v3271_v8, %v2602_v48  ;;  %v3422_v17 = vld [vmem:[#allocation2 + $0x1af] sm:$0xff] }
 0x111   : > { %v1686_v36 = vmul.f32 %v3392_v24, %v1647_v46  ;;  %2108 = vtanh.f32 %v1521_v60  ;;  %v1458_v49 = vmul.f32 0.044715, %v1426_v61  ;;  %v1031_v63 = vmul.f32 %v3332_v12, %v2612_v57 }
 0x112   : > { %v1263_v25 = vadd.f32 %v1231_v0, %v1163_v39  ;;  %v963_v19 = vadd.f32 %v931_v7, %v863_v34  ;;  %v564_v44 = vadd.f32 %v3175_v27, %v526_v11  ;;  %v632_v3 = vmul.f32 %v3283_v21, %v2604_v50  ;;  %v3434_v34 = vld [vmem:[#allocation2 + $0x1b1] sm:$0xff] }
 0x113   : > { %v1725_v8 = vadd.f32 %v3403_v20, %v1686_v36  ;;  %v1490_v62 = vadd.f32 %v1458_v49, %v3360_v29  ;;  %v1132_v28 = vmul.f32 %v2614_v58, %v3385_v43  ;;  %v1232_v23 = vmul.f32 %v2616_v59, %v3387_v22 }
 0x114   : > { %v2107_v32 = vpop.eup %2106  ;;  %v3411_v6 = vadd.f32 %v1331_v30, %v1263_v25  ;;  %v1063_v31 = vadd.f32 %v1031_v63, %v963_v19  ;;  %v664_v26 = vadd.f32 %v632_v3, %v564_v44  ;;  %v732_v1 = vmul.f32 %v3292_v41, %v2606_v51  ;;  %v3427_v41 = vld [vmem:[#allocation2 + $0x1b0] sm:$0xff] }
 0x115   : > { %v1757_v2 = vadd.f32 %v1725_v8, %v3132_v54  ;;  %v1584_v37 = vadd.f32 1.0, %v2107_v32  ;;  %v1522_v13 = vmul.f32 0.7978846, %v1490_v62  ;;  %v1332_v33 = vmul.f32 %v3151_v38, %v3397_v42 }
 0x116   : > { %v1395_v45 = vmul.f32 %v3411_v6, %v3411_v6  ;;  %v1164_v10 = vadd.f32 %v1132_v28, %v1063_v31  ;;  %v764_v16 = vadd.f32 %v732_v1, %v664_v26  ;;  %v832_v0 = vmul.f32 %v3352_v47, %v2608_v52 }
 0x117   : > { %1789 = vst [vmem:[%s2882_s14 + $0x88] sm:$0xff] %v1757_v2  ;;  %v1616_v4 = vmul.f32 0.5, %v1584_v37  ;;  %2110 = vtanh.f32 %v1522_v13  ;;  %v932_v54 = vmul.f32 %v3362_v5, %v2610_v55  ;;  %v527_v46 = vmul.f32 %v3311_v40, %v2602_v48 }
 0x118   : > { %v1427_v60 = vmul.f32 %v1395_v45, %v3411_v6  ;;  %v1264_v61 = vadd.f32 %v1232_v23, %v1164_v10  ;;  %v864_v30 = vadd.f32 %v832_v0, %v764_v16  ;;  %v1032_v39 = vmul.f32 %v3366_v53, %v2612_v57  ;;  %v3460_v10 = vld [vmem:[#allocation2 + $0x1c7] sm:$0xff] }
 0x119   : > { %v1648_v7 = vmul.f32 %v1616_v4, %v3299_v9  ;;  %v1133_v11 = vmul.f32 %v2614_v58, %v3422_v17  ;;  %v565_v36 = vadd.f32 %v3175_v27, %v527_v46  ;;  %v633_v49 = vmul.f32 %v3322_v15, %v2604_v50 }
 0x11a   : > { %v1459_v40 = vmul.f32 0.044715, %v1427_v60  ;;  %v3442_v63 = vadd.f32 %v1332_v33, %v1264_v61  ;;  %v964_v25 = vadd.f32 %v932_v54, %v864_v30  ;;  %v1233_v19 = vmul.f32 %v2616_v59, %v3427_v41  ;;  %v3468_v30 = vld [vmem:[#allocation2 + $0x1c8] sm:$0xff] }
 0x11b   : > { %v2109_v44 = vpop.eup %2108  ;;  %v1687_v3 = vmul.f32 %v3392_v24, %v1648_v7  ;;  %v1333_v9 = vmul.f32 %v3151_v38, %v3434_v34  ;;  %v665_v8 = vadd.f32 %v633_v49, %v565_v36  ;;  %v733_v62 = vmul.f32 %v3332_v12, %v2606_v51 }
 0x11c   : > { %v1585_v28 = vadd.f32 1.0, %v2109_v44  ;;  %v1491_v23 = vadd.f32 %v1459_v40, %v3411_v6  ;;  %v1396_v32 = vmul.f32 %v3442_v63, %v3442_v63  ;;  %v1064_v31 = vadd.f32 %v1032_v39, %v964_v25  ;;  %v3480_v25 = vld [vmem:[#allocation2 + $0x1c9] sm:$0xff] }
 0x11d   : > { %v1726_v26 = vadd.f32 %v3403_v20, %v1687_v3  ;;  %v765_v1 = vadd.f32 %v733_v62, %v665_v8  ;;  %v833_v2 = vmul.f32 %v3385_v43, %v2608_v52  ;;  %v933_v37 = vmul.f32 %v3387_v22, %v2610_v55 }
 0x11e   : > { %v1617_v13 = vmul.f32 0.5, %v1585_v28  ;;  %v1523_v33 = vmul.f32 0.7978846, %v1491_v23  ;;  %v1428_v12 = vmul.f32 %v1396_v32, %v3442_v63  ;;  %v1165_v45 = vadd.f32 %v1133_v11, %v1064_v31 }
 0x11f   : > { %v1758_v16 = vadd.f32 %v1726_v26, %v3172_v35  ;;  %v865_v0 = vadd.f32 %v833_v2, %v765_v1  ;;  %v1033_v4 = vmul.f32 %v3397_v42, %v2612_v57  ;;  %v528_v54 = vmul.f32 %v3352_v47, %v2602_v48 }
 0x120   : > { %v1649_v46 = vmul.f32 %v1617_v13, %v3330_v56  ;;  %2112 = vtanh.f32 %v1523_v33  ;;  %v1460_v60 = vmul.f32 0.044715, %v1428_v12  ;;  %v1265_v61 = vadd.f32 %v1233_v19, %v1165_v45  ;;  %v3498_v45 = vld [vmem:[#allocation2 + $0x1cf] sm:$0xff] }
 0x121   : > { %v2111_v39 = vpop.eup %2110  ;;  %1790 = vst [vmem:[%s2882_s14 + $0x90] sm:$0xff] %v1758_v16  ;;  %v965_v7 = vadd.f32 %v933_v37, %v865_v0  ;;  %v1134_v35 = vmul.f32 %v2614_v58, %v3460_v10  ;;  %v566_v11 = vadd.f32 %v3175_v27, %v528_v54  ;;  %v634_v36 = vmul.f32 %v3362_v5, %v2604_v50 }
 0x122   : > { %v1688_v47 = vmul.f32 %v3392_v24, %v1649_v46  ;;  %v1586_v49 = vadd.f32 1.0, %v2111_v39  ;;  %v1492_v56 = vadd.f32 %v1460_v60, %v3442_v63  ;;  %v3478_v40 = vadd.f32 %v1333_v9, %v1265_v61  ;;  %v3508_v46 = vld [vmem:[#allocation2 + $0x1d0] sm:$0xff] }
 0x123   : > { %v1065_v19 = vadd.f32 %v1033_v4, %v965_v7  ;;  %v1234_v44 = vmul.f32 %v2616_v59, %v3468_v30  ;;  %v666_v3 = vadd.f32 %v634_v36, %v566_v11  ;;  %v734_v8 = vmul.f32 %v3366_v53, %v2606_v51 }
 0x124   : > { %v1727_v62 = vadd.f32 %v3403_v20, %v1688_v47  ;;  %v1618_v28 = vmul.f32 0.5, %v1586_v49  ;;  %v1524_v23 = vmul.f32 0.7978846, %v1492_v56  ;;  %v1397_v32 = vmul.f32 %v3478_v40, %v3478_v40  ;;  %v3521_v56 = vld [vmem:[#allocation2 + $0x1d1] sm:$0xff] }
 0x125   : > { %v1166_v9 = vadd.f32 %v1134_v35, %v1065_v19  ;;  %v1334_v31 = vmul.f32 %v3151_v38, %v3480_v25  ;;  %v766_v26 = vadd.f32 %v734_v8, %v666_v3  ;;  %v834_v1 = vmul.f32 %v3422_v17, %v2608_v52 }
 0x126   : > { %v1759_v2 = vadd.f32 %v1727_v62, %v3211_v14  ;;  %v1650_v53 = vmul.f32 %v1618_v28, %v3360_v29  ;;  %2114 = vtanh.f32 %v1524_v23  ;;  %v1429_v37 = vmul.f32 %v1397_v32, %v3478_v40 }
 0x127   : > { %v1266_v13 = vadd.f32 %v1234_v44, %v1166_v9  ;;  %v866_v33 = vadd.f32 %v834_v1, %v766_v26  ;;  %v934_v12 = vmul.f32 %v3427_v41, %v2610_v55  ;;  %v529_v16 = vmul.f32 %v3385_v43, %v2602_v48  ;;  %v3529_v9 = vld [vmem:[#allocation2 + $0x1e7] sm:$0xff] }
 0x128   : > { %1791 = vst [vmem:[%s2882_s14 + $0x98] sm:$0xff] %v1759_v2  ;;  %v1689_v0 = vmul.f32 %v3392_v24, %v1650_v53  ;;  %v1461_v4 = vmul.f32 0.044715, %v1429_v37  ;;  %v1034_v14 = vmul.f32 %v3434_v34, %v2612_v57  ;;  %v635_v61 = vmul.f32 %v3387_v22, %v2604_v50 }
 0x129   : > { %v3506_v29 = vadd.f32 %v1334_v31, %v1266_v13  ;;  %v966_v54 = vadd.f32 %v934_v12, %v866_v33  ;;  %v567_v60 = vadd.f32 %v3175_v27, %v529_v16  ;;  %v1135_v35 = vmul.f32 %v2614_v58, %v3498_v45  ;;  %v3539_v13 = vld [vmem:[#allocation2 + $0x1e8] sm:$0xff] }
 0x12a   : > { %v2113_v39 = vpop.eup %2112  ;;  %v1728_v43 = vadd.f32 %v3403_v20, %v1689_v0  ;;  %v1493_v7 = vadd.f32 %v1461_v4, %v3478_v40  ;;  %v735_v11 = vmul.f32 %v3397_v42, %v2606_v51  ;;  %v1235_v8 = vmul.f32 %v2616_v59, %v3508_v46 }
 0x12b   : > { %v1587_v36 = vadd.f32 1.0, %v2113_v39  ;;  %v1398_v47 = vmul.f32 %v3506_v29, %v3506_v29  ;;  %v1066_v49 = vadd.f32 %v1034_v14, %v966_v54  ;;  %v667_v19 = vadd.f32 %v635_v61, %v567_v60  ;;  %v3552_v60 = vld [vmem:[#allocation2 + $0x1e9] sm:$0xff] }
 0x12c   : > { %v1760_v44 = vadd.f32 %v1728_v43, %v3241_v18  ;;  %v1525_v3 = vmul.f32 0.7978846, %v1493_v7  ;;  %v835_v62 = vmul.f32 %v3460_v10, %v2608_v52  ;;  %v1335_v31 = vmul.f32 %v3151_v38, %v3521_v56 }
 0x12d   : > { %v1619_v28 = vmul.f32 0.5, %v1587_v36  ;;  %v1430_v42 = vmul.f32 %v1398_v47, %v3506_v29  ;;  %v1167_v23 = vadd.f32 %v1135_v35, %v1066_v49  ;;  %v767_v32 = vadd.f32 %v735_v11, %v667_v19 }
 0x12e   : > { %1792 = vst [vmem:[%s2882_s14 + $0xa0] sm:$0xff] %v1760_v44  ;;  %2116 = vtanh.f32 %v1525_v3  ;;  %v935_v18 = vmul.f32 %v3468_v30, %v2610_v55  ;;  %v530_v26 = vmul.f32 %v3422_v17, %v2602_v48  ;;  %v1035_v12 = vmul.f32 %v3480_v25, %v2612_v57 }
 0x12f   : > { %v1651_v1 = vmul.f32 %v1619_v28, %v3411_v6  ;;  %v1462_v2 = vmul.f32 0.044715, %v1430_v42  ;;  %v1267_v53 = vadd.f32 %v1235_v8, %v1167_v23  ;;  %v867_v37 = vadd.f32 %v835_v62, %v767_v32  ;;  %v3565_v8 = vld [vmem:[#allocation2 + $0x1ef] sm:$0xff] }
 0x130   : > { %v2115_v33 = vpop.eup %2114  ;;  %v1136_v16 = vmul.f32 %v2614_v58, %v3529_v9  ;;  %v568_v0 = vadd.f32 %v3175_v27, %v530_v26  ;;  %v636_v4 = vmul.f32 %v3427_v41, %v2604_v50  ;;  %v1236_v39 = vmul.f32 %v2616_v59, %v3539_v13 }
 0x131   : > { %v1690_v17 = vmul.f32 %v3392_v24, %v1651_v1  ;;  %v1588_v6 = vadd.f32 1.0, %v2115_v33  ;;  %v1494_v14 = vadd.f32 %v1462_v2, %v3506_v29  ;;  %v3550_v54 = vadd.f32 %v1335_v31, %v1267_v53  ;;  %v3572_v31 = vld [vmem:[#allocation2 + $0x1f0] sm:$0xff] }
 0x132   : > { %v967_v61 = vadd.f32 %v935_v18, %v867_v37  ;;  %v668_v43 = vadd.f32 %v636_v4, %v568_v0  ;;  %v736_v7 = vmul.f32 %v3434_v34, %v2606_v51  ;;  %v1336_v19 = vmul.f32 %v3151_v38, %v3552_v60  ;;  %v3582_v33 = vld [vmem:[#allocation2 + $0x1f1] sm:$0xff] }
 0x133   : > { %v1729_v35 = vadd.f32 %v3403_v20, %v1690_v17  ;;  %v1620_v11 = vmul.f32 0.5, %v1588_v6  ;;  %v1526_v36 = vmul.f32 0.7978846, %v1494_v14  ;;  %v1399_v47 = vmul.f32 %v3550_v54, %v3550_v54 }
 0x134   : > { %v1067_v49 = vadd.f32 %v1035_v12, %v967_v61  ;;  %v768_v44 = vadd.f32 %v736_v7, %v668_v43  ;;  %v836_v3 = vmul.f32 %v3498_v45, %v2608_v52  ;;  %v936_v32 = vmul.f32 %v3508_v46, %v2610_v55 }
 0x135   : > { %v1761_v34 = vadd.f32 %v1729_v35, %v3283_v21  ;;  %v1652_v62 = vmul.f32 %v1620_v11, %v3442_v63  ;;  %2118 = vtanh.f32 %v1526_v36  ;;  %v1431_v28 = vmul.f32 %v1399_v47, %v3550_v54 }
 0x136   : > { %v1168_v42 = vadd.f32 %v1136_v16, %v1067_v49  ;;  %v868_v23 = vadd.f32 %v836_v3, %v768_v44  ;;  %v531_v18 = vmul.f32 %v3460_v10, %v2602_v48  ;;  %v1036_v21 = vmul.f32 %v3521_v56, %v2612_v57  ;;  %v1102_v44 = vld [vmem:[#allocation2 + $0x207] sm:$0xff] }
 0x137   : > { %1793 = vst [vmem:[%s2882_s14 + $0xa8] sm:$0xff] %v1761_v34  ;;  %v1691_v26 = vmul.f32 %v3392_v24, %v1652_v62  ;;  %v1463_v1 = vmul.f32 0.044715, %v1431_v28  ;;  %v1137_v63 = vmul.f32 %v2614_v58, %v3565_v8  ;;  %v637_v10 = vmul.f32 %v3468_v30, %v2604_v50 }
 0x138   : > { %v2117_v2 = vpop.eup %2116  ;;  %v1268_v53 = vadd.f32 %v1236_v39, %v1168_v42  ;;  %v968_v37 = vadd.f32 %v936_v32, %v868_v23  ;;  %v569_v12 = vadd.f32 %v3175_v27, %v531_v18  ;;  %v1237_v17 = vmul.f32 %v2616_v59, %v3572_v31  ;;  %v3611_v23 = vld [vmem:[#allocation2 + $0x208] sm:$0xff] }
 0x139   : > { %v1730_v16 = vadd.f32 %v3403_v20, %v1691_v26  ;;  %v1589_v0 = vadd.f32 1.0, %v2117_v2  ;;  %v1495_v4 = vadd.f32 %v1463_v1, %v3550_v54  ;;  %v737_v39 = vmul.f32 %v3480_v25, %v2606_v51 }
 0x13a   : > { %v3591_v6 = vadd.f32 %v1336_v19, %v1268_v53  ;;  %v1068_v14 = vadd.f32 %v1036_v21, %v968_v37  ;;  %v669_v61 = vadd.f32 %v637_v10, %v569_v12  ;;  %v1337_v11 = vmul.f32 %v3151_v38, %v3582_v33  ;;  %v1302_v53 = vld [vmem:[#allocation2 + $0x209] sm:$0xff] }
 0x13b   : > { %v1762_v43 = vadd.f32 %v1730_v16, %v3322_v15  ;;  %v1621_v7 = vmul.f32 0.5, %v1589_v0  ;;  %v1527_v35 = vmul.f32 0.7978846, %v1495_v4  ;;  %v837_v19 = vmul.f32 %v3529_v9, %v2608_v52 }
 0x13c   : > { %v1400_v36 = vmul.f32 %v3591_v6, %v3591_v6  ;;  %v1169_v47 = vadd.f32 %v1137_v63, %v1068_v14  ;;  %v769_v49 = vadd.f32 %v737_v39, %v669_v61  ;;  %v937_v15 = vmul.f32 %v3539_v13, %v2610_v55 }
 0x13d   : > { %1794 = vst [vmem:[%s2882_s14 + $0xb0] sm:$0xff] %v1762_v43  ;;  %v1653_v3 = vmul.f32 %v1621_v7, %v3478_v40  ;;  %2120 = vtanh.f32 %v1527_v35  ;;  %v532_v25 = vmul.f32 %v3498_v45, %v2602_v48  ;;  %v1037_v42 = vmul.f32 %v3552_v60, %v2612_v57 }
 0x13e   : > { %v1432_v34 = vmul.f32 %v1400_v36, %v3591_v6  ;;  %v1269_v62 = vadd.f32 %v1237_v17, %v1169_v47  ;;  %v869_v28 = vadd.f32 %v837_v19, %v769_v49  ;;  %v1138_v40 = vmul.f32 %v2614_v58, %v1102_v44  ;;  %v1103_v47 = vld [vmem:[#allocation2 + $0x20f] sm:$0xff] }
 0x13f   : > { %v2119_v32 = vpop.eup %2118  ;;  %v1692_v18 = vmul.f32 %v3392_v24, %v1653_v3  ;;  %v570_v26 = vadd.f32 %v3175_v27, %v532_v25  ;;  %v638_v1 = vmul.f32 %v3508_v46, %v2604_v50  ;;  %v1238_v12 = vmul.f32 %v2616_v59, %v3611_v23 }
 0x140   : > { %v1590_v45 = vadd.f32 1.0, %v2119_v32  ;;  %v1464_v21 = vmul.f32 0.044715, %v1432_v34  ;;  %v3618_v63 = vadd.f32 %v1337_v11, %v1269_v62  ;;  %v969_v2 = vadd.f32 %v937_v15, %v869_v28 }
 0x141   : > { %v1731_v37 = vadd.f32 %v3403_v20, %v1692_v18  ;;  %v670_v10 = vadd.f32 %v638_v1, %v570_v26  ;;  %v738_v16 = vmul.f32 %v3521_v56, %v2606_v51  ;;  %v1338_v39 = vmul.f32 %v3151_v38, %v1302_v53  ;;  %v3650_v1 = vld [vmem:[#allocation2 + $0x210] sm:$0xff] }
 0x142   : > { %v1622_v0 = vmul.f32 0.5, %v1590_v45  ;;  %v1496_v4 = vadd.f32 %v1464_v21, %v3591_v6  ;;  %v1401_v17 = vmul.f32 %v3618_v63, %v3618_v63  ;;  %v1069_v14 = vadd.f32 %v1037_v42, %v969_v2  ;;  %v1303_v45 = vld [vmem:[#allocation2 + $0x211] sm:$0xff] }
 0x143   : > { %v1763_v61 = vadd.f32 %v1731_v37, %v3362_v5  ;;  %v770_v43 = vadd.f32 %v738_v16, %v670_v10  ;;  %v838_v7 = vmul.f32 %v3565_v8, %v2608_v52  ;;  %v938_v19 = vmul.f32 %v3572_v31, %v2610_v55 }
 0x144   : > { %v1654_v35 = vmul.f32 %v1622_v0, %v3506_v29  ;;  %v1528_v11 = vmul.f32 0.7978846, %v1496_v4  ;;  %v1433_v56 = vmul.f32 %v1401_v17, %v3618_v63  ;;  %v1170_v36 = vadd.f32 %v1138_v40, %v1069_v14 }
 0x145   : > { %1795 = vst [vmem:[%s2882_s14 + $0xb8] sm:$0xff] %v1763_v61  ;;  %v870_v49 = vadd.f32 %v838_v7, %v770_v43  ;;  %v1038_v5 = vmul.f32 %v3582_v33, %v2612_v57  ;;  %v533_v3 = vmul.f32 %v3529_v9, %v2602_v48  ;;  %v1139_v28 = vmul.f32 %v2614_v58, %v1103_v47 }
 0x146   : > { %v1693_v15 = vmul.f32 %v3392_v24, %v1654_v35  ;;  %2122 = vtanh.f32 %v1528_v11  ;;  %v1465_v29 = vmul.f32 0.044715, %v1433_v56  ;;  %v1270_v25 = vadd.f32 %v1238_v12, %v1170_v36  ;;  %v1204_v36 = vld [vmem:[#allocation2 + $0x228] sm:$0xff] }
 0x147   : > { %v2121_v34 = vpop.eup %2120  ;;  %v970_v62 = vadd.f32 %v938_v19, %v870_v49  ;;  %v571_v42 = vadd.f32 %v3175_v27, %v533_v3  ;;  %v639_v32 = vmul.f32 %v3539_v13, %v2604_v50  ;;  %v739_v37 = vmul.f32 %v3552_v60, %v2606_v51 }
 0x148   : > { %v1732_v18 = vadd.f32 %v3403_v20, %v1693_v15  ;;  %v1591_v40 = vadd.f32 1.0, %v2121_v34  ;;  %v1497_v26 = vadd.f32 %v1465_v29, %v3618_v63  ;;  %v3648_v9 = vadd.f32 %v1338_v39, %v1270_v25 }
 0x149   : > { %v1070_v21 = vadd.f32 %v1038_v5, %v970_v62  ;;  %v671_v2 = vadd.f32 %v639_v32, %v571_v42  ;;  %v839_v12 = vmul.f32 %v1102_v44, %v2608_v52  ;;  %v1239_v14 = vmul.f32 %v2616_v59, %v3650_v1 }
 0x14a   : > { %v1764_v10 = vadd.f32 %v1732_v18, %v3387_v22  ;;  %v1623_v16 = vmul.f32 0.5, %v1591_v40  ;;  %v1529_v0 = vmul.f32 0.7978846, %v1497_v26  ;;  %v1402_v4 = vmul.f32 %v3648_v9, %v3648_v9 }
 0x14b   : > { %v1171_v17 = vadd.f32 %v1139_v28, %v1070_v21  ;;  %v1339_v61 = vmul.f32 %v3151_v38, %v1303_v45  ;;  %v771_v39 = vadd.f32 %v739_v37, %v671_v2  ;;  %v534_v22 = vmul.f32 %v3565_v8, %v2602_v48  ;;  %v2140_v48 = vld [vmem:[#allocation2 + $0x7] sm:$0xff] }
 0x14c   : > { %1796 = vst [vmem:[%s2882_s14 + $0xc0] sm:$0xff] %v1764_v10  ;;  %v1655_v43 = vmul.f32 %v1623_v16, %v3550_v54  ;;  %2124 = vtanh.f32 %v1529_v0  ;;  %v1434_v60 = vmul.f32 %v1402_v4, %v3648_v9  ;;  %v939_v35 = vmul.f32 %v3611_v23, %v2610_v55  ;;  %v2141_v37 = vld [vmem:[%s2593_s10 + $0x8] ss:$0 sm:$0xff]  ;;  %s2174_s10 = sshll.u32 %s2291_s6, 4  ;;  %s2175_s10 = int_to_ptr.vmem [resolvable:$false] %s2174_s10 }
 0x14d   : > { %v1271_v44 = vadd.f32 %v1239_v14, %v1171_v17  ;;  %v871_v7 = vadd.f32 %v839_v12, %v771_v39  ;;  %v1039_v11 = vmul.f32 %v1302_v53, %v2612_v57  ;;  %v572_v49 = vadd.f32 %v3175_v27, %v534_v22  ;;  %s2176_s16 = scalar_lea.vmem %s2175_s10, 8192  ;;  %p2177_p2 = scmp.lt.s32.totalorder %s3727_s18, %s2175_s10 }
 0x14e   : > { %v1694_v56 = vmul.f32 %v3392_v24, %v1655_v43  ;;  %v1466_v38 = vmul.f32 0.044715, %v1434_v60  ;;  %v640_v54 = vmul.f32 %v3572_v31, %v2604_v50  ;;  %v1140_v8 = vmul.f32 %v2140_v48, %v2614_v58  ;;  %p2178_p1 = scmp.lt.s32.totalorder %s2176_s16, %s2170_s22 }
 0x14f   : > { %v3673_v19 = vadd.f32 %v1339_v61, %v1271_v44  ;;  %v971_v5 = vadd.f32 %v939_v35, %v871_v7  ;;  %v740_v3 = vmul.f32 %v3582_v33, %v2606_v51  ;;  %v840_v27 = vmul.f32 %v1103_v47, %v2608_v52  ;;  %v1304_v33 = vld [vmem:[#allocation2 + $0x229] sm:$0xff]  ;;  %v1305_v44 = vld [vmem:[#allocation2 + $0x231] sm:$0xff] }
 0x150   : > { %v2123_v15 = vpop.eup %2122  ;;  %v1733_v53 = vadd.f32 %v3403_v20, %v1694_v56  ;;  %v1498_v29 = vadd.f32 %v1466_v38, %v3648_v9  ;;  %v672_v25 = vadd.f32 %v640_v54, %v572_v49  ;;  %v1240_v58 = vmul.f32 %v2616_v59, %v1204_v36  ;;  %p2179_p5 = por %p2178_p1, %p2177_p2 }
 0x151   : > { %v1592_v34 = vadd.f32 1.0, %v2123_v15  ;;  %v1403_v50 = vmul.f32 %v3673_v19, %v3673_v19  ;;  %v1071_v62 = vadd.f32 %v1039_v11, %v971_v5  ;;  %v940_v47 = vmul.f32 %v3650_v1, %v2610_v55 }
 0x152   : > { %v1765_v28 = vadd.f32 %v1733_v53, %v3427_v41  ;;  %v1530_v51 = vmul.f32 0.7978846, %v1498_v29  ;;  %v772_v42 = vadd.f32 %v740_v3, %v672_v25  ;;  %v1340_v12 = vmul.f32 %v2141_v37, %v1304_v33  ;;  %v1205_v41 = vld [vmem:[#allocation2 + $0x230] sm:$0xff]  ;;  %p2180_p8 = pnand %p2179_p5, %p2173_p0 }
 0x153   : > { %v1624_v32 = vmul.f32 0.5, %v1592_v34  ;;  %v1435_v18 = vmul.f32 %v1403_v50, %v3673_v19  ;;  %v1172_v40 = vadd.f32 %v1140_v8, %v1071_v62  ;;  %v1040_v0 = vmul.f32 %v1303_v45, %v2612_v57 }
 0x154   : > { %1797 = vst [vmem:[%s2882_s14 + $0xc8] sm:$0xff] %v1765_v28  ;;  %2126 = vtanh.f32 %v1530_v51  ;;  %v872_v52 = vadd.f32 %v840_v27, %v772_v42  ;;  %v1241_v55 = vmul.f32 %v2616_v59, %v1205_v41  ;;  %v1341_v56 = vmul.f32 %v2141_v37, %v1305_v44 }
 0x155   : > { %v1656_v26 = vmul.f32 %v1624_v32, %v3591_v6  ;;  %v1467_v21 = vmul.f32 0.044715, %v1435_v18  ;;  %v1272_v2 = vadd.f32 %v1240_v58, %v1172_v40 }
 0x156   : > { %v2125_v10 = vpop.eup %2124  ;;  %v972_v16 = vadd.f32 %v940_v47, %v872_v52 }
 0x157   : > { %v1695_v4 = vmul.f32 %v3392_v24, %v1656_v26  ;;  %v1593_v17 = vadd.f32 1.0, %v2125_v10  ;;  %v1499_v14 = vadd.f32 %v1467_v21, %v3673_v19  ;;  %v1372_v61 = vadd.f32 %v1340_v12, %v1272_v2 }
 0x158   : > { %v1072_v39 = vadd.f32 %v1040_v0, %v972_v16 }
 0x159   : > { %v1734_v6 = vadd.f32 %v3403_v20, %v1695_v4  ;;  %v1625_v43 = vmul.f32 0.5, %v1593_v17  ;;  %v1531_v60 = vmul.f32 0.7978846, %v1499_v14  ;;  %v1404_v22 = vmul.f32 %v1372_v61, %v1372_v61 }
 0x15a   : > { %v1173_v7 = vadd.f32 %v1140_v8, %v1072_v39 }
 0x15b   : > { %v1766_v35 = vadd.f32 %v1734_v6, %v3468_v30  ;;  %v1657_v57 = vmul.f32 %v1625_v43, %v3618_v63  ;;  %2128 = vtanh.f32 %v1531_v60  ;;  %v1436_v45 = vmul.f32 %v1404_v22, %v1372_v61 }
 0x15c   : > { %v1273_v11 = vadd.f32 %v1241_v55, %v1173_v7 }
 0x15d   : > { %1798 = vst [vmem:[%s2882_s14 + $0xd0] sm:$0xff] %v1766_v35  ;;  %v1696_v38 = vmul.f32 %v3392_v24, %v1657_v57  ;;  %v1468_v59 = vmul.f32 0.044715, %v1436_v45 }
 0x15e   : > { %v2127_v36 = vpop.eup %2126  ;;  %v1373_v49 = vadd.f32 %v1341_v56, %v1273_v11 }
 0x15f   : > { %v1735_v54 = vadd.f32 %v3403_v20, %v1696_v38  ;;  %v1594_v5 = vadd.f32 1.0, %v2127_v36  ;;  %v1500_v48 = vadd.f32 %v1468_v59, %v1372_v61 }
 0x160   : > { %v1405_v8 = vmul.f32 %v1373_v49, %v1373_v49 }
 0x161   : > { %v1767_v30 = vadd.f32 %v1735_v54, %v3508_v46  ;;  %v1626_v3 = vmul.f32 0.5, %v1594_v5  ;;  %v1532_v63 = vmul.f32 0.7978846, %v1500_v48 }
 0x162   : > { %v1437_v15 = vmul.f32 %v1405_v8, %v1373_v49 }
 0x163   : > { %1799 = vst [vmem:[%s2882_s14 + $0xd8] sm:$0xff] %v1767_v30  ;;  %v1658_v53 = vmul.f32 %v1626_v3, %v3648_v9  ;;  %2130 = vtanh.f32 %v1532_v63 }
 0x164   : > { %v1469_v29 = vmul.f32 0.044715, %v1437_v15 }
 0x165   : > { %v2129_v25 = vpop.eup %2128  ;;  %v1697_v27 = vmul.f32 %v3392_v24, %v1658_v53 }
 0x166   : > { %v1595_v34 = vadd.f32 1.0, %v2129_v25  ;;  %v1501_v50 = vadd.f32 %v1469_v29, %v1373_v49 }
 0x167   : > { %v1736_v62 = vadd.f32 %v3403_v20, %v1697_v27 }
 0x168   : > { %v1627_v58 = vmul.f32 0.5, %v1595_v34  ;;  %v1533_v46 = vmul.f32 0.7978846, %v1501_v50 }
 0x169   : > { %v1768_v28 = vadd.f32 %v1736_v62, %v3539_v13 }
 0x16a   : > { %v1659_v51 = vmul.f32 %v1627_v58, %v3673_v19  ;;  %2132 = vtanh.f32 %v1533_v46 }
 0x16b   : > { %1800 = vst [vmem:[%s2882_s14 + $0xe0] sm:$0xff] %v1768_v28 }
 0x16c   : > { %v1698_v9 = vmul.f32 %v3392_v24, %v1659_v51 }
 0x16d   : > { %v2131_v33 = vpop.eup %2130 }
 0x16e   : > { %v1737_v42 = vadd.f32 %v3403_v20, %v1698_v9  ;;  %v1596_v32 = vadd.f32 1.0, %v2131_v33 }
 0x170   : > { %v1769_v18 = vadd.f32 %v1737_v42, %v3572_v31  ;;  %v1628_v40 = vmul.f32 0.5, %v1596_v32 }
 0x172   : > { %1801 = vst [vmem:[%s2882_s14 + $0xe8] sm:$0xff] %v1769_v18  ;;  %v1660_v52 = vmul.f32 %v1628_v40, %v1372_v61 }
 0x174   : > { %v2133_v47 = vpop.eup %2132  ;;  %v1699_v13 = vmul.f32 %v3392_v24, %v1660_v52 }
 0x175   : > { %v1597_v19 = vadd.f32 1.0, %v2133_v47 }
 0x176   : > { %v1738_v26 = vadd.f32 %v3403_v20, %v1699_v13 }
 0x177   : > { %v1629_v21 = vmul.f32 0.5, %v1597_v19 }
 0x178   : > { %v1770_v2 = vadd.f32 %v1738_v26, %v3611_v23 }
 0x179   : > { %v1661_v37 = vmul.f32 %v1629_v21, %v1373_v49 }
 0x17a   : > { %1802 = vst [vmem:[%s2882_s14 + $0xf0] sm:$0xff] %v1770_v2 }
 0x17b   : > { %v1700_v31 = vmul.f32 %v3392_v24, %v1661_v37 }
 0x17d   : > { %v1739_v12 = vadd.f32 %v3403_v20, %v1700_v31 }
 0x17f   : > { %v1771_v23 = vadd.f32 %v1739_v12, %v3650_v1 }
 0x181   : > { %1803 = vst [vmem:[%s2882_s14 + $0xf8] sm:$0xff] %v1771_v23 }
 0x182   : > { %2183 = shalt.err (!%p2180_p8)
}
 0x183   : > { %s2184_s12 = scalar_lea.hbm %s3725_s23, 4096  ;;  %s2188_s29 = scalar_lea.hbm %s3794_s5, 16384 }
 0x184   : > { %p2185_p9 = scmp.ne.s32.totalorder %s3725_s23, %s2184_s12  ;;  %p2189_p12 = scmp.lt.u32.totalorder %s3725_s23, %s3794_s5 }
 0x185   : > { %p2190_p13 = scmp.lt.u32.totalorder %s2188_s29, %s2184_s12  ;;  %p2192_p6 = scmp.lt.u32.totalorder %s2184_s12, %s3725_s23 }
 0x186   : > { %p2186_p3 = pnand %p2185_p9, %p3831_p10 }
 0x187   : > { %p2191_p4 = por %p2190_p13, %p2189_p12 }
 0x188   : > { %p2187_p7 = pneg %p2186_p3 }
 0x189   : > { %p2193_p11 = por %p2192_p6, %p2191_p4 }
 0x18b   : > { %p2194_p0 = pnand %p2193_p11, %p2187_p7 }
 0x18d   : > { %2197 = shalt.err (!%p2194_p0)
}
 0x18e   : > { %s2292_s9 = smov 128   ;;  %s2293_s15 = smov 256  }
 0x18f   : > { %s2294_s0 = smov 8  }
 0x190   : > { %1976 = dma.vmem_to_hbm [thread:$0]  (%p3831_p10), %s3727_s18, 4096, %s3725_s23, %s1805_s24, %s2292_s9, %s2293_s15, %s2294_s0  }
 0x191 PF: > { %s3832_s11 = sld [smem:[#allocation15_spill]]  ;;  %p1982_p2 = scmp.ge.s32.totalorder %s2284_s27, 2 }
 0x192   : > { %s1834_s28 = sand.u32 1, %s2256_s20  }
 0x193   : > { %s1835_s22 = scalar_lea.sflag [#allocation5], %s1834_s28 }
 0x197   : > { %p3833_p1 = scmp.ne.s32.totalorder %s3832_s11, 0 }
 0x199   : > { %p1979_p5 = pnand %p1982_p2, %p3833_p1 }
 0x19b   : > { %2243 = dma.done.wait (!%p1979_p5), %s1835_s22, 4096  }
 0x19c   : > { %2245 = vsyncadd (!%p1979_p5), %s1835_s22, 4294963200  ;;  %s21_s27 = sadd.s32 1, %s2284_s27   ;;  %s3834_s6 = sld [smem:[#allocation13_spill]] }
 0x19d   : > { %p18_p8 = scmp.ge.s32.totalorder %s21_s27, 6   ;;  %s3835_s17 = sld [smem:[#allocation10_spill]] }
 0x19e   : > { %s3836_s22 = sld [smem:[#allocation14_spill]]  ;;  %s3837_s30 = sld [smem:[#allocation11_spill]] }
 0x19f   : > { %s3838_s10 = sld [smem:[#allocation12_spill]]  ;;  %s3839_s18 = smov %s2252_s19 }
 0x1a0   : > { %s3841_s20 = smov %s2260_s21  ;;  %s3843_s23 = smov %s2276_s25 }
 0x1a1   : > { %s3844_s24 = smov %s2280_s26  ;;  %20 = sbr.rel (!%p18_p8) target bundleno = 10 (0xa), region = 143 }
 0x1a2   : > { %s3840_s19 = smov %s3834_s6 }
 0x1a3   : > { %s3842_s21 = smov %s3835_s17 }
 0x1a4   : > { %s3845_s25 = smov %s3837_s30 }
 0x1a5   : > { %s3846_s26 = smov %s3838_s10 }
 0x1a8   :  { %1840 = vsyncpa [#allocation4], 1 }
 0x1a9   :  { %1842 = vsyncpa [#allocation4 + $0x1], 1 }
 0x1aa   :  { %1843 = vsyncpa [#allocation5], 1 }
 0x1ab   :  { %1845 = vsyncpa [#allocation5 + $0x1], 1 }

</bundles_post_ra>
